<compile_context>
chip_gen: v6e
topology: v6e:2x2x1
jax: 0.10.0
libtpu: 0.0.40
codegen_flags: <defaults>
</compile_context>

<pallas_src>
import numpy as np
import jax
import jax.numpy as jnp
from jax.experimental import pallas as pl
from jax.experimental.pallas import tpu as pltpu

LN_EPS = 1e-5


# ----------------------------- in-kernel helpers -----------------------------
def _hardswish(x):
    # torch.nn.Hardswish: x * relu6(x + 3) / 6
    return x * jnp.clip(x + 3.0, 0.0, 6.0) * (1.0 / 6.0)


def _ln_segments(x, seg, widths):
    """Per-sample LayerNorm over each scale's own (Tp*F) lane segment of a
    (N, mixF) tile.  `seg` is a (n_scales, mixF) 0/1 indicator row matrix; the
    whole thing is full-width VPU math (masked reductions + broadcasts), f32,
    no lane slicing / concatenation inside the kernel."""
    out = jnp.zeros_like(x)
    for s, w in enumerate(widths):
        m = seg[s:s + 1, :]                                    # (1, mixF)
        inv_w = 1.0 / float(w)
        mean = jnp.sum(x * m, axis=-1, keepdims=True) * inv_w  # (N, 1)
        xc = (x - mean) * m                                    # centered, masked
        var = jnp.sum(xc * xc, axis=-1, keepdims=True) * inv_w
        out = out + xc * jax.lax.rsqrt(var + LN_EPS)
    return out


def _ln_tile(x, w, b):
    # nn.LayerNorm((stock_num, mix_dim)): one mean/var over the full tile.
    mean = jnp.mean(x)
    var = jnp.mean(jnp.square(x - mean))
    return (x - mean) * jax.lax.rsqrt(var + LN_EPS) * w + b


# ------------------------------- fused kernel --------------------------------
def _make_fused_kernel(seg_widths, n_stock, market_dim):
    """seg_widths: static per-scale Tp*F lane widths; n_stock / market_dim static."""

    def kernel(x_ref, seg_ref, kconv_ref, kcb_ref, l1w_ref, l1b_ref,
               kw1_ref, kw2_ref, l2w_ref, l2b_ref, kl1_ref, kl2_ref,
               kfc_ref, fcb_ref, lnw_ref, lnb_ref, m1_ref, m2_ref,
               fwa_ref, fwb_ref, fb_ref, o_ref):
        f32, bf16 = jnp.float32, jnp.bfloat16
        x = x_ref[...]                                   # (N, T*F) bf16, resident
        seg = seg_ref[...]                               # (n_scales, mixF) f32

        # Conv1d(F, F, k, stride=k) for ALL scales in one wide bf16 matmul.
        conv = jnp.dot(x, kconv_ref[...], preferred_element_type=f32) + kcb_ref[...]

        # IndicatorMixing (all scales; W1/W2 block-diag across timesteps+scales).
        h = _ln_segments(conv, seg, seg_widths) * l1w_ref[...] + l1b_ref[...]
        h = _hardswish(jnp.dot(h.astype(bf16), kw1_ref[...], preferred_element_type=f32))
        h = jnp.dot(h.astype(bf16), kw2_ref[...], preferred_element_type=f32)
        xi = conv + h

        # TimeMixing (causal mixing packed as kron(L^T, I_F), block-diag over scales).
        h = _ln_segments(xi, seg, seg_widths) * l2w_ref[...] + l2b_ref[...]
        u = _hardswish(jnp.dot(h.astype(bf16), kl1_ref[...], preferred_element_type=f32))
        v = jnp.dot(u.astype(bf16), kl2_ref[...], preferred_element_type=f32)
        xt = xi + v

        # Per-scale fc(F, 1): one block-diag matmul -> full (N, mix_dim) slab
        # as a value (no VMEM scratch round trip).
        mix = jnp.dot(xt.astype(bf16), kfc_ref[...], preferred_element_type=f32) + fcb_ref[...]

        # ------------------------------ StockMixing --------------------------
        # Everything here stays f32 on the VPU (no tiny-M / tiny-K MXU passes).
        hn = _ln_tile(mix, lnw_ref[...], lnb_ref[...])   # (N, mix_dim)
        m1 = m1_ref[...]                                  # (market, N)
        m2 = m2_ref[...]                                  # (N, market)
        # M1 @ hn as n_stock rank-1 VPU updates -> (market, mix_dim)
        mm = m1[:, 0:1] * hn[0:1, :]
        for n_i in range(1, n_stock):
            mm = mm + m1[:, n_i:n_i + 1] * hn[n_i:n_i + 1, :]
        mm = _hardswish(mm)
        # M2 @ mm as market rank-1 VPU updates -> (N, mix_dim)
        acc = m2[:, 0:1] * mm[0:1, :]
        for k_i in range(1, market_dim):
            acc = acc + m2[:, k_i:k_i + 1] * mm[k_i:k_i + 1, :]
        out = mix + acc
        # fc(concat([mix, out], dim=1)): VPU multiply + lane reduction.
        o_ref[...] = (jnp.sum(mix * fwa_ref[...] + out * fwb_ref[...],
                              axis=-1, keepdims=True) + fb_ref[...])

    return kernel


# ------------------------------- full forward --------------------------------
def stock_mixer_forward(x, packed):
    N, T, F = x.shape
    x_flat = x.reshape(N, T * F).astype(jnp.bfloat16)      # single reshape + cast
    args = [x_flat] + list(packed["args"])
    kernel = _make_fused_kernel(packed["seg_widths"], N, packed["market_dim"])
    bytes_accessed = sum(int(np.prod(a.shape)) * a.dtype.itemsize for a in args) + N * 4
    out = pl.pallas_call(
        kernel,
        grid=(1,),
        in_specs=[pl.BlockSpec(a.shape, lambda i: (0, 0)) for a in args],
        out_specs=pl.BlockSpec((N, 1), lambda i: (0, 0)),
        out_shape=jax.ShapeDtypeStruct((N, 1), jnp.float32),
        compiler_params=pltpu.CompilerParams(
            dimension_semantics=("arbitrary",),
            vmem_limit_bytes=32 * 1024 * 1024),            # explicit budget (v7x: 64 MiB phys)
        cost_estimate=pl.CostEstimate(flops=packed["flops"],
                                      transcendentals=packed["transcendentals"],
                                      bytes_accessed=int(bytes_accessed)),
    )(*args)
    return out                                             # (N, 1)


# --------------------------- parameter initialization ------------------------
def init_params(key, F, T, H, market_dim, N, scale_factors):
    # Forward semantics do not depend on weight values; use well-conditioned
    # (1/sqrt(fan_in)) test init so the bf16-vs-f32 comparison stays tight.
    params = {"scales": []}
    for k in scale_factors:
        Tp = T // k
        key, *ks = jax.random.split(key, 9)
        w = jax.random.normal(ks[0], (F, F, k)) / np.sqrt(F * k)     # (co, ci, j)
        b = jax.random.normal(ks[1], (1, F)) / np.sqrt(F * k)
        # conv matmul weight: index [j*F + ci, co] = w[co, ci, j]
        conv_w = jnp.transpose(w, (2, 1, 0)).reshape(k * F, F)
        params["scales"].append(dict(
            k=k,
            conv_w=conv_w.astype(jnp.float32),
            conv_b=b.astype(jnp.float32),
            ln1_w=jnp.ones((Tp, F), jnp.float32),
            ln1_b=jnp.zeros((Tp, F), jnp.float32),
            W1=(jax.random.normal(ks[2], (F, H)) / np.sqrt(F)).astype(jnp.float32),
            W2=(jax.random.normal(ks[3], (H, F)) / np.sqrt(H)).astype(jnp.float32),
            ln2_w=jnp.ones((Tp, F), jnp.float32),
            ln2_b=jnp.zeros((Tp, F), jnp.float32),
            L1=jnp.tril(jax.random.normal(ks[4], (Tp, Tp)) * 0.01).astype(jnp.float32),
            L2=jnp.tril(jax.random.normal(ks[5], (Tp, Tp)) * 0.01).astype(jnp.float32),
            fc_w=(jax.random.normal(ks[6], (F, 1)) / np.sqrt(F)).astype(jnp.float32),
            fc_b=(jax.random.normal(ks[7], (1, 1)) / np.sqrt(F)).astype(jnp.float32),
        ))
    mix_dim = sum(T // k for k in scale_factors)
    key, k1, k2, k3, k4 = jax.random.split(key, 5)
    fc_w = (jax.random.normal(k3, (2 * mix_dim, 1)) / np.sqrt(2 * mix_dim)).astype(jnp.float32)
    params["stock"] = dict(
        ln_w=jnp.ones((N, mix_dim), jnp.float32),
        ln_b=jnp.zeros((N, mix_dim), jnp.float32),
        M1=(jax.random.normal(k1, (market_dim, N)) / np.sqrt(N)).astype(jnp.float32),
        M2=(jax.random.normal(k2, (N, market_dim)) / np.sqrt(market_dim)).astype(jnp.float32),
        fc_w_a=fc_w[:mix_dim],
        fc_w_b=fc_w[mix_dim:],
        fc_b=(jax.random.normal(k4, (1, 1)) / np.sqrt(2 * mix_dim)).astype(jnp.float32),
    )
    return params


# ------------------------------ parameter packing -----------------------------
def _block_diag(blocks):
    blocks = [np.asarray(b, np.float32) for b in blocks]
    R = sum(b.shape[0] for b in blocks)
    C = sum(b.shape[1] for b in blocks)
    out = np.zeros((R, C), np.float32)
    r = c = 0
    for b in blocks:
        out[r:r + b.shape[0], c:c + b.shape[1]] = b
        r += b.shape[0]
        c += b.shape[1]
    return out


def pack_params(params, N, T, F, H):
    """Fold per-timestep / causal / per-scale structure into ONE set of
    Kron + block-diagonal weights (host side, once) so the kernel runs six
    wide bf16 matmuls over the whole batch and all scales at once."""
    kconv_c, kcb_c = [], []
    l1w_c, l1b_c, l2w_c, l2b_c, fcb_c = [], [], [], [], []
    kw1_b, kw2_b, kl1_b, kl2_b, kfc_b = [], [], [], [], []
    seg_widths = []
    for p in params["scales"]:
        k = p["k"]
        Tp = T // k
        eyeT = np.eye(Tp, dtype=np.float32)
        eyeF = np.eye(F, dtype=np.float32)
        kconv_c.append(np.kron(eyeT, np.asarray(p["conv_w"])))        # (T*F, Tp*F)
        kcb_c.append(np.tile(np.asarray(p["conv_b"]), (1, Tp)))       # (1, Tp*F)
        l1w_c.append(np.asarray(p["ln1_w"]).reshape(1, Tp * F))
        l1b_c.append(np.asarray(p["ln1_b"]).reshape(1, Tp * F))
        kw1_b.append(np.kron(eyeT, np.asarray(p["W1"])))              # (Tp*F, Tp*H)
        kw2_b.append(np.kron(eyeT, np.asarray(p["W2"])))              # (Tp*H, Tp*F)
        l2w_c.append(np.asarray(p["ln2_w"]).reshape(1, Tp * F))
        l2b_c.append(np.asarray(p["ln2_b"]).reshape(1, Tp * F))
        kl1_b.append(np.kron(np.asarray(p["L1"]).T, eyeF))            # (Tp*F, Tp*F)
        kl2_b.append(np.kron(np.asarray(p["L2"]).T, eyeF))
        kfc_b.append(np.kron(eyeT, np.asarray(p["fc_w"])))            # (Tp*F, Tp)
        fcb_c.append(np.tile(np.asarray(p["fc_b"]), (1, Tp)))         # (1, Tp)
        seg_widths.append(Tp * F)

    mixF = sum(seg_widths)
    mix_dim = sum(T // p["k"] for p in params["scales"])
    mixH = sum((T // p["k"]) * H for p in params["scales"])

    # segment indicator rows for per-scale LayerNorm inside the kernel
    seg = np.zeros((len(seg_widths), mixF), np.float32)
    c0 = 0
    for s, w in enumerate(seg_widths):
        seg[s, c0:c0 + w] = 1.0
        c0 += w

    bf16, f32 = jnp.bfloat16, jnp.float32
    sm = params["stock"]
    market_dim = int(sm["M1"].shape[0])
    args = [
        jnp.asarray(seg, f32),
        jnp.asarray(np.concatenate(kconv_c, axis=1), bf16),           # KCONV (T*F, mixF)
        jnp.asarray(np.concatenate(kcb_c, axis=1), f32),
        jnp.asarray(np.concatenate(l1w_c, axis=1), f32),
        jnp.asarray(np.concatenate(l1b_c, axis=1), f32),
        jnp.asarray(_block_diag(kw1_b), bf16),                        # KW1 (mixF, mixH)
        jnp.asarray(_block_diag(kw2_b), bf16),                        # KW2 (mixH, mixF)
        jnp.asarray(np.concatenate(l2w_c, axis=1), f32),
        jnp.asarray(np.concatenate(l2b_c, axis=1), f32),
        jnp.asarray(_block_diag(kl1_b), bf16),                        # KL1 (mixF, mixF)
        jnp.asarray(_block_diag(kl2_b), bf16),                        # KL2 (mixF, mixF)
        jnp.asarray(_block_diag(kfc_b), bf16),                        # KFC (mixF, mix_dim)
        jnp.asarray(np.concatenate(fcb_c, axis=1), f32),              # (1, mix_dim)
        sm["ln_w"], sm["ln_b"], sm["M1"], sm["M2"],
        jnp.transpose(sm["fc_w_a"]), jnp.transpose(sm["fc_w_b"]), sm["fc_b"],
    ]
    flops = 2 * N * (T * F * mixF + 2 * mixF * mixH + 2 * mixF * mixF + mixF * mix_dim)
    flops += 4 * N * market_dim * mix_dim + 4 * N * mix_dim
    transcendentals = N * (2 * len(seg_widths) + 1) + market_dim
    return dict(args=args, seg_widths=tuple(seg_widths), mix_dim=mix_dim,
                market_dim=market_dim, flops=int(flops),
                transcendentals=int(transcendentals))


# ------------------------------ pure-JAX reference ---------------------------
def ref_forward(x, params, T, F, *, bf16_matmuls=False):
    """Reference of the original module.  With bf16_matmuls=True the per-scale
    matmul operands are rounded to bf16 (f32 accumulation), mirroring the
    kernel's MXU precision for a tight structural comparison."""
    HIGH = jax.lax.Precision.HIGHEST
    q = (lambda t: t.astype(jnp.bfloat16)) if bf16_matmuls else (lambda t: t)

    def mm(eq, a, b):
        return jnp.einsum(eq, q(a), q(b), precision=HIGH,
                          preferred_element_type=jnp.float32)

    def ln2d(t, w, b):
        mean = jnp.mean(t, axis=(-2, -1), keepdims=True)
        var = jnp.mean((t - mean) ** 2, axis=(-2, -1), keepdims=True)
        return (t - mean) * jax.lax.rsqrt(var + LN_EPS) * w + b

    def hsw(t):
        return t * jnp.clip(t + 3.0, 0.0, 6.0) / 6.0

    N = x.shape[0]
    outs = []
    for p in params["scales"]:
        k = p["k"]
        Tp = T // k
        xr = x.reshape(N, Tp, k * F)
        conv = mm("ntc,cf->ntf", xr, p["conv_w"]) + p["conv_b"]
        h = ln2d(conv, p["ln1_w"], p["ln1_b"])
        h = hsw(mm("ntf,fh->nth", h, p["W1"]))
        h = mm("nth,hf->ntf", h, p["W2"])
        xi = conv + h
        h = ln2d(xi, p["ln2_w"], p["ln2_b"])
        u = hsw(mm("st,ntf->nsf", p["L1"], h))
        v = mm("st,ntf->nsf", p["L2"], u)
        xt = xi + v
        o = mm("ntf,fo->nto", xt, p["fc_w"]) + p["fc_b"]
        outs.append(o[..., 0])
    h = jnp.concatenate(outs, axis=1)
    sm = params["stock"]
    hn = ln2d(h, sm["ln_w"], sm["ln_b"])
    m = hsw(jnp.einsum("mn,nd->md", sm["M1"], hn, precision=HIGH))
    m = jnp.einsum("nm,md->nd", sm["M2"], m, precision=HIGH)
    out = h + m
    cat = jnp.concatenate([h, out], axis=1)
    fc_w = jnp.concatenate([sm["fc_w_a"], sm["fc_w_b"]], axis=0)
    return jnp.einsum("nd,do->no", cat, fc_w, precision=HIGH) + sm["fc_b"]


# ------------------------------------ main ------------------------------------
if __name__ == "__main__":
    F, T, H, MARKET, N = 4, 16, 32, 4, 8          # feature, seq, hidden, market, stocks
    scale_factors = [1, 2, 4]

    key = jax.random.PRNGKey(0)
    kx, kp = jax.random.split(key)
    x = jax.random.normal(kx, (N, T, F), jnp.float32)
    params = init_params(kp, F, T, H, MARKET, N, scale_factors)
    packed = pack_params(params, N, T, F, H)

    out = stock_mixer_forward(x, packed)
    out = jax.block_until_ready(out)
    assert out.shape == (N, 1)

    # Structural check: reference with matched bf16 matmul rounding.
    ref_q = ref_forward(x, params, T, F, bf16_matmuls=True)
    np.testing.assert_allclose(np.asarray(out), np.asarray(ref_q), rtol=1e-2, atol=1e-2)

    # End-to-end check against the pure-f32 reference (bf16 weight/activation
    # rounding in the MXU path bounds the achievable tolerance).
    ref = ref_forward(x, params, T, F, bf16_matmuls=False)
    np.testing.assert_allclose(np.asarray(out), np.asarray(ref), rtol=3e-2, atol=3e-2)

    print("KERNEL_OK")
</pallas_src>

<mosaic_0001>
module attributes {stable_mosaic.version = 11 : i64} {
  func.func @kernel(%arg0: i32, %arg1: memref<8x64xbf16, #tpu.memory_space<vmem>>, %arg2: memref<3x112xf32, #tpu.memory_space<vmem>>, %arg3: memref<64x112xbf16, #tpu.memory_space<vmem>>, %arg4: memref<1x112xf32, #tpu.memory_space<vmem>>, %arg5: memref<1x112xf32, #tpu.memory_space<vmem>>, %arg6: memref<1x112xf32, #tpu.memory_space<vmem>>, %arg7: memref<112x896xbf16, #tpu.memory_space<vmem>>, %arg8: memref<896x112xbf16, #tpu.memory_space<vmem>>, %arg9: memref<1x112xf32, #tpu.memory_space<vmem>>, %arg10: memref<1x112xf32, #tpu.memory_space<vmem>>, %arg11: memref<112x112xbf16, #tpu.memory_space<vmem>>, %arg12: memref<112x112xbf16, #tpu.memory_space<vmem>>, %arg13: memref<112x28xbf16, #tpu.memory_space<vmem>>, %arg14: memref<1x28xf32, #tpu.memory_space<vmem>>, %arg15: memref<8x28xf32, #tpu.memory_space<vmem>>, %arg16: memref<8x28xf32, #tpu.memory_space<vmem>>, %arg17: memref<4x8xf32, #tpu.memory_space<vmem>>, %arg18: memref<8x4xf32, #tpu.memory_space<vmem>>, %arg19: memref<1x28xf32, #tpu.memory_space<vmem>>, %arg20: memref<1x28xf32, #tpu.memory_space<vmem>>, %arg21: memref<1x1xf32, #tpu.memory_space<vmem>>, %arg22: memref<8x1xf32, #tpu.memory_space<vmem>>) attributes {dimension_semantics = [#tpu.dimension_semantics<arbitrary>], iteration_bounds = array<i64: 1>, scalar_prefetch = 0 : i64, scratch_operands = 0 : i64, tpu.core_type = #tpu.core_type<tc>, window_params = [{pipeline_mode = #tpu.pipeline_mode<synchronous>, transform_indices = @transform_0, window_bounds = array<i64: 8, 64>}, {pipeline_mode = #tpu.pipeline_mode<synchronous>, transform_indices = @transform_1, window_bounds = array<i64: 3, 112>}, {pipeline_mode = #tpu.pipeline_mode<synchronous>, transform_indices = @transform_2, window_bounds = array<i64: 64, 112>}, {pipeline_mode = #tpu.pipeline_mode<synchronous>, transform_indices = @transform_3, window_bounds = array<i64: 1, 112>}, {pipeline_mode = #tpu.pipeline_mode<synchronous>, transform_indices = @transform_4, window_bounds = array<i64: 1, 112>}, {pipeline_mode = #tpu.pipeline_mode<synchronous>, transform_indices = @transform_5, window_bounds = array<i64: 1, 112>}, {pipeline_mode = #tpu.pipeline_mode<synchronous>, transform_indices = @transform_6, window_bounds = array<i64: 112, 896>}, {pipeline_mode = #tpu.pipeline_mode<synchronous>, transform_indices = @transform_7, window_bounds = array<i64: 896, 112>}, {pipeline_mode = #tpu.pipeline_mode<synchronous>, transform_indices = @transform_8, window_bounds = array<i64: 1, 112>}, {pipeline_mode = #tpu.pipeline_mode<synchronous>, transform_indices = @transform_9, window_bounds = array<i64: 1, 112>}, {pipeline_mode = #tpu.pipeline_mode<synchronous>, transform_indices = @transform_10, window_bounds = array<i64: 112, 112>}, {pipeline_mode = #tpu.pipeline_mode<synchronous>, transform_indices = @transform_11, window_bounds = array<i64: 112, 112>}, {pipeline_mode = #tpu.pipeline_mode<synchronous>, transform_indices = @transform_12, window_bounds = array<i64: 112, 28>}, {pipeline_mode = #tpu.pipeline_mode<synchronous>, transform_indices = @transform_13, window_bounds = array<i64: 1, 28>}, {pipeline_mode = #tpu.pipeline_mode<synchronous>, transform_indices = @transform_14, window_bounds = array<i64: 8, 28>}, {pipeline_mode = #tpu.pipeline_mode<synchronous>, transform_indices = @transform_15, window_bounds = array<i64: 8, 28>}, {pipeline_mode = #tpu.pipeline_mode<synchronous>, transform_indices = @transform_16, window_bounds = array<i64: 4, 8>}, {pipeline_mode = #tpu.pipeline_mode<synchronous>, transform_indices = @transform_17, window_bounds = array<i64: 8, 4>}, {pipeline_mode = #tpu.pipeline_mode<synchronous>, transform_indices = @transform_18, window_bounds = array<i64: 1, 28>}, {pipeline_mode = #tpu.pipeline_mode<synchronous>, transform_indices = @transform_19, window_bounds = array<i64: 1, 28>}, {pipeline_mode = #tpu.pipeline_mode<synchronous>, transform_indices = @transform_20, window_bounds = array<i64: 1, 1>}, {pipeline_mode = #tpu.pipeline_mode<synchronous>, transform_indices = @transform_21, window_bounds = array<i64: 8, 1>}]} {
    %c0 = arith.constant 0 : index
    %c0_0 = arith.constant 0 : index
    %0 = vector.load %arg1[%c0, %c0_0] : memref<8x64xbf16, #tpu.memory_space<vmem>>, vector<8x64xbf16>
    %c0_1 = arith.constant 0 : index
    %c0_2 = arith.constant 0 : index
    %1 = vector.load %arg2[%c0_1, %c0_2] : memref<3x112xf32, #tpu.memory_space<vmem>>, vector<3x112xf32>
    %c0_3 = arith.constant 0 : index
    %c0_4 = arith.constant 0 : index
    %2 = vector.load %arg3[%c0_3, %c0_4] : memref<64x112xbf16, #tpu.memory_space<vmem>>, vector<64x112xbf16>
    %cst = arith.constant dense<0.000000e+00> : vector<8x112xf32>
    %3 = tpu.matmul %0, %2, %cst {dimension_numbers = #tpu.dot_dimension_numbers<[1], [0], [0], [1], [0, 0, 1, 1], [], []>} : vector<8x64xbf16>, vector<64x112xbf16>, vector<8x112xf32> -> vector<8x112xf32>
    %c0_5 = arith.constant 0 : index
    %c0_6 = arith.constant 0 : index
    %4 = vector.load %arg4[%c0_5, %c0_6] : memref<1x112xf32, #tpu.memory_space<vmem>>, vector<1x112xf32>
    %5 = vector.broadcast %4 : vector<1x112xf32> to vector<8x112xf32>
    %6 = arith.addf %3, %5 : vector<8x112xf32>
    %cst_7 = arith.constant 0.000000e+00 : f32
    %7 = vector.broadcast %cst_7 : f32 to vector<8x112xf32>
    %8 = vector.extract_strided_slice %1 {offsets = [0, 0], sizes = [1, 112], strides = [1, 1]} : vector<3x112xf32> to vector<1x112xf32>
    %9 = vector.broadcast %8 : vector<1x112xf32> to vector<8x112xf32>
    %10 = arith.mulf %6, %9 : vector<8x112xf32>
    %cst_8 = arith.constant dense<0.000000e+00> : vector<8xf32>
    %11 = vector.multi_reduction <add>, %10, %cst_8 [1] : vector<8x112xf32> to vector<8xf32>
    %12 = vector.shape_cast %11 : vector<8xf32> to vector<8x1xf32>
    %cst_9 = arith.constant 1.562500e-02 : f32
    %13 = vector.broadcast %cst_9 : f32 to vector<8x1xf32>
    %14 = arith.mulf %12, %13 : vector<8x1xf32>
    %15 = vector.broadcast %14 : vector<8x1xf32> to vector<8x112xf32>
    %16 = arith.subf %6, %15 : vector<8x112xf32>
    %17 = vector.broadcast %8 : vector<1x112xf32> to vector<8x112xf32>
    %18 = arith.mulf %16, %17 : vector<8x112xf32>
    %19 = arith.mulf %18, %18 : vector<8x112xf32>
    %cst_10 = arith.constant dense<0.000000e+00> : vector<8xf32>
    %20 = vector.multi_reduction <add>, %19, %cst_10 [1] : vector<8x112xf32> to vector<8xf32>
    %21 = vector.shape_cast %20 : vector<8xf32> to vector<8x1xf32>
    %cst_11 = arith.constant 1.562500e-02 : f32
    %22 = vector.broadcast %cst_11 : f32 to vector<8x1xf32>
    %23 = arith.mulf %21, %22 : vector<8x1xf32>
    %cst_12 = arith.constant 9.99999974E-6 : f32
    %24 = vector.broadcast %cst_12 : f32 to vector<8x1xf32>
    %25 = arith.addf %23, %24 : vector<8x1xf32>
    %26 = math.rsqrt %25 : vector<8x1xf32>
    %27 = vector.broadcast %26 : vector<8x1xf32> to vector<8x112xf32>
    %28 = arith.mulf %18, %27 : vector<8x112xf32>
    %29 = arith.addf %7, %28 : vector<8x112xf32>
    %30 = vector.extract_strided_slice %1 {offsets = [1, 0], sizes = [1, 112], strides = [1, 1]} : vector<3x112xf32> to vector<1x112xf32>
    %31 = vector.broadcast %30 : vector<1x112xf32> to vector<8x112xf32>
    %32 = arith.mulf %6, %31 : vector<8x112xf32>
    %cst_13 = arith.constant dense<0.000000e+00> : vector<8xf32>
    %33 = vector.multi_reduction <add>, %32, %cst_13 [1] : vector<8x112xf32> to vector<8xf32>
    %34 = vector.shape_cast %33 : vector<8xf32> to vector<8x1xf32>
    %cst_14 = arith.constant 3.125000e-02 : f32
    %35 = vector.broadcast %cst_14 : f32 to vector<8x1xf32>
    %36 = arith.mulf %34, %35 : vector<8x1xf32>
    %37 = vector.broadcast %36 : vector<8x1xf32> to vector<8x112xf32>
    %38 = arith.subf %6, %37 : vector<8x112xf32>
    %39 = vector.broadcast %30 : vector<1x112xf32> to vector<8x112xf32>
    %40 = arith.mulf %38, %39 : vector<8x112xf32>
    %41 = arith.mulf %40, %40 : vector<8x112xf32>
    %cst_15 = arith.constant dense<0.000000e+00> : vector<8xf32>
    %42 = vector.multi_reduction <add>, %41, %cst_15 [1] : vector<8x112xf32> to vector<8xf32>
    %43 = vector.shape_cast %42 : vector<8xf32> to vector<8x1xf32>
    %cst_16 = arith.constant 3.125000e-02 : f32
    %44 = vector.broadcast %cst_16 : f32 to vector<8x1xf32>
    %45 = arith.mulf %43, %44 : vector<8x1xf32>
    %cst_17 = arith.constant 9.99999974E-6 : f32
    %46 = vector.broadcast %cst_17 : f32 to vector<8x1xf32>
    %47 = arith.addf %45, %46 : vector<8x1xf32>
    %48 = math.rsqrt %47 : vector<8x1xf32>
    %49 = vector.broadcast %48 : vector<8x1xf32> to vector<8x112xf32>
    %50 = arith.mulf %40, %49 : vector<8x112xf32>
    %51 = arith.addf %29, %50 : vector<8x112xf32>
    %52 = vector.extract_strided_slice %1 {offsets = [2, 0], sizes = [1, 112], strides = [1, 1]} : vector<3x112xf32> to vector<1x112xf32>
    %53 = vector.broadcast %52 : vector<1x112xf32> to vector<8x112xf32>
    %54 = arith.mulf %6, %53 : vector<8x112xf32>
    %cst_18 = arith.constant dense<0.000000e+00> : vector<8xf32>
    %55 = vector.multi_reduction <add>, %54, %cst_18 [1] : vector<8x112xf32> to vector<8xf32>
    %56 = vector.shape_cast %55 : vector<8xf32> to vector<8x1xf32>
    %cst_19 = arith.constant 6.250000e-02 : f32
    %57 = vector.broadcast %cst_19 : f32 to vector<8x1xf32>
    %58 = arith.mulf %56, %57 : vector<8x1xf32>
    %59 = vector.broadcast %58 : vector<8x1xf32> to vector<8x112xf32>
    %60 = arith.subf %6, %59 : vector<8x112xf32>
    %61 = vector.broadcast %52 : vector<1x112xf32> to vector<8x112xf32>
    %62 = arith.mulf %60, %61 : vector<8x112xf32>
    %63 = arith.mulf %62, %62 : vector<8x112xf32>
    %cst_20 = arith.constant dense<0.000000e+00> : vector<8xf32>
    %64 = vector.multi_reduction <add>, %63, %cst_20 [1] : vector<8x112xf32> to vector<8xf32>
    %65 = vector.shape_cast %64 : vector<8xf32> to vector<8x1xf32>
    %cst_21 = arith.constant 6.250000e-02 : f32
    %66 = vector.broadcast %cst_21 : f32 to vector<8x1xf32>
    %67 = arith.mulf %65, %66 : vector<8x1xf32>
    %cst_22 = arith.constant 9.99999974E-6 : f32
    %68 = vector.broadcast %cst_22 : f32 to vector<8x1xf32>
    %69 = arith.addf %67, %68 : vector<8x1xf32>
    %70 = math.rsqrt %69 : vector<8x1xf32>
    %71 = vector.broadcast %70 : vector<8x1xf32> to vector<8x112xf32>
    %72 = arith.mulf %62, %71 : vector<8x112xf32>
    %73 = arith.addf %51, %72 : vector<8x112xf32>
    %c0_23 = arith.constant 0 : index
    %c0_24 = arith.constant 0 : index
    %74 = vector.load %arg5[%c0_23, %c0_24] : memref<1x112xf32, #tpu.memory_space<vmem>>, vector<1x112xf32>
    %75 = vector.broadcast %74 : vector<1x112xf32> to vector<8x112xf32>
    %76 = arith.mulf %73, %75 : vector<8x112xf32>
    %c0_25 = arith.constant 0 : index
    %c0_26 = arith.constant 0 : index
    %77 = vector.load %arg6[%c0_25, %c0_26] : memref<1x112xf32, #tpu.memory_space<vmem>>, vector<1x112xf32>
    %78 = vector.broadcast %77 : vector<1x112xf32> to vector<8x112xf32>
    %79 = arith.addf %76, %78 : vector<8x112xf32>
    %80 = arith.truncf %79 : vector<8x112xf32> to vector<8x112xbf16>
    %c0_27 = arith.constant 0 : index
    %c0_28 = arith.constant 0 : index
    %81 = vector.load %arg7[%c0_27, %c0_28] : memref<112x896xbf16, #tpu.memory_space<vmem>>, vector<112x896xbf16>
    %cst_29 = arith.constant dense<0.000000e+00> : vector<8x896xf32>
    %82 = tpu.matmul %80, %81, %cst_29 {dimension_numbers = #tpu.dot_dimension_numbers<[1], [0], [0], [1], [0, 0, 1, 1], [], []>} : vector<8x112xbf16>, vector<112x896xbf16>, vector<8x896xf32> -> vector<8x896xf32>
    %cst_30 = arith.constant 3.000000e+00 : f32
    %83 = vector.broadcast %cst_30 : f32 to vector<8x896xf32>
    %84 = arith.addf %82, %83 : vector<8x896xf32>
    %cst_31 = arith.constant 0.000000e+00 : f32
    %cst_32 = arith.constant 6.000000e+00 : f32
    %85 = vector.broadcast %cst_31 : f32 to vector<8x896xf32>
    %86 = arith.maximumf %85, %84 : vector<8x896xf32>
    %87 = vector.broadcast %cst_32 : f32 to vector<8x896xf32>
    %88 = arith.minimumf %87, %86 : vector<8x896xf32>
    %89 = arith.mulf %82, %88 : vector<8x896xf32>
    %cst_33 = arith.constant 0.166666672 : f32
    %90 = vector.broadcast %cst_33 : f32 to vector<8x896xf32>
    %91 = arith.mulf %89, %90 : vector<8x896xf32>
    %92 = arith.truncf %91 : vector<8x896xf32> to vector<8x896xbf16>
    %c0_34 = arith.constant 0 : index
    %c0_35 = arith.constant 0 : index
    %93 = vector.load %arg8[%c0_34, %c0_35] : memref<896x112xbf16, #tpu.memory_space<vmem>>, vector<896x112xbf16>
    %cst_36 = arith.constant dense<0.000000e+00> : vector<8x112xf32>
    %94 = tpu.matmul %92, %93, %cst_36 {dimension_numbers = #tpu.dot_dimension_numbers<[1], [0], [0], [1], [0, 0, 1, 1], [], []>} : vector<8x896xbf16>, vector<896x112xbf16>, vector<8x112xf32> -> vector<8x112xf32>
    %95 = arith.addf %6, %94 : vector<8x112xf32>
    %cst_37 = arith.constant 0.000000e+00 : f32
    %96 = vector.broadcast %cst_37 : f32 to vector<8x112xf32>
    %97 = vector.extract_strided_slice %1 {offsets = [0, 0], sizes = [1, 112], strides = [1, 1]} : vector<3x112xf32> to vector<1x112xf32>
    %98 = vector.broadcast %97 : vector<1x112xf32> to vector<8x112xf32>
    %99 = arith.mulf %95, %98 : vector<8x112xf32>
    %cst_38 = arith.constant dense<0.000000e+00> : vector<8xf32>
    %100 = vector.multi_reduction <add>, %99, %cst_38 [1] : vector<8x112xf32> to vector<8xf32>
    %101 = vector.shape_cast %100 : vector<8xf32> to vector<8x1xf32>
    %cst_39 = arith.constant 1.562500e-02 : f32
    %102 = vector.broadcast %cst_39 : f32 to vector<8x1xf32>
    %103 = arith.mulf %101, %102 : vector<8x1xf32>
    %104 = vector.broadcast %103 : vector<8x1xf32> to vector<8x112xf32>
    %105 = arith.subf %95, %104 : vector<8x112xf32>
    %106 = vector.broadcast %97 : vector<1x112xf32> to vector<8x112xf32>
    %107 = arith.mulf %105, %106 : vector<8x112xf32>
    %108 = arith.mulf %107, %107 : vector<8x112xf32>
    %cst_40 = arith.constant dense<0.000000e+00> : vector<8xf32>
    %109 = vector.multi_reduction <add>, %108, %cst_40 [1] : vector<8x112xf32> to vector<8xf32>
    %110 = vector.shape_cast %109 : vector<8xf32> to vector<8x1xf32>
    %cst_41 = arith.constant 1.562500e-02 : f32
    %111 = vector.broadcast %cst_41 : f32 to vector<8x1xf32>
    %112 = arith.mulf %110, %111 : vector<8x1xf32>
    %cst_42 = arith.constant 9.99999974E-6 : f32
    %113 = vector.broadcast %cst_42 : f32 to vector<8x1xf32>
    %114 = arith.addf %112, %113 : vector<8x1xf32>
    %115 = math.rsqrt %114 : vector<8x1xf32>
    %116 = vector.broadcast %115 : vector<8x1xf32> to vector<8x112xf32>
    %117 = arith.mulf %107, %116 : vector<8x112xf32>
    %118 = arith.addf %96, %117 : vector<8x112xf32>
    %119 = vector.extract_strided_slice %1 {offsets = [1, 0], sizes = [1, 112], strides = [1, 1]} : vector<3x112xf32> to vector<1x112xf32>
    %120 = vector.broadcast %119 : vector<1x112xf32> to vector<8x112xf32>
    %121 = arith.mulf %95, %120 : vector<8x112xf32>
    %cst_43 = arith.constant dense<0.000000e+00> : vector<8xf32>
    %122 = vector.multi_reduction <add>, %121, %cst_43 [1] : vector<8x112xf32> to vector<8xf32>
    %123 = vector.shape_cast %122 : vector<8xf32> to vector<8x1xf32>
    %cst_44 = arith.constant 3.125000e-02 : f32
    %124 = vector.broadcast %cst_44 : f32 to vector<8x1xf32>
    %125 = arith.mulf %123, %124 : vector<8x1xf32>
    %126 = vector.broadcast %125 : vector<8x1xf32> to vector<8x112xf32>
    %127 = arith.subf %95, %126 : vector<8x112xf32>
    %128 = vector.broadcast %119 : vector<1x112xf32> to vector<8x112xf32>
    %129 = arith.mulf %127, %128 : vector<8x112xf32>
    %130 = arith.mulf %129, %129 : vector<8x112xf32>
    %cst_45 = arith.constant dense<0.000000e+00> : vector<8xf32>
    %131 = vector.multi_reduction <add>, %130, %cst_45 [1] : vector<8x112xf32> to vector<8xf32>
    %132 = vector.shape_cast %131 : vector<8xf32> to vector<8x1xf32>
    %cst_46 = arith.constant 3.125000e-02 : f32
    %133 = vector.broadcast %cst_46 : f32 to vector<8x1xf32>
    %134 = arith.mulf %132, %133 : vector<8x1xf32>
    %cst_47 = arith.constant 9.99999974E-6 : f32
    %135 = vector.broadcast %cst_47 : f32 to vector<8x1xf32>
    %136 = arith.addf %134, %135 : vector<8x1xf32>
    %137 = math.rsqrt %136 : vector<8x1xf32>
    %138 = vector.broadcast %137 : vector<8x1xf32> to vector<8x112xf32>
    %139 = arith.mulf %129, %138 : vector<8x112xf32>
    %140 = arith.addf %118, %139 : vector<8x112xf32>
    %141 = vector.extract_strided_slice %1 {offsets = [2, 0], sizes = [1, 112], strides = [1, 1]} : vector<3x112xf32> to vector<1x112xf32>
    %142 = vector.broadcast %141 : vector<1x112xf32> to vector<8x112xf32>
    %143 = arith.mulf %95, %142 : vector<8x112xf32>
    %cst_48 = arith.constant dense<0.000000e+00> : vector<8xf32>
    %144 = vector.multi_reduction <add>, %143, %cst_48 [1] : vector<8x112xf32> to vector<8xf32>
    %145 = vector.shape_cast %144 : vector<8xf32> to vector<8x1xf32>
    %cst_49 = arith.constant 6.250000e-02 : f32
    %146 = vector.broadcast %cst_49 : f32 to vector<8x1xf32>
    %147 = arith.mulf %145, %146 : vector<8x1xf32>
    %148 = vector.broadcast %147 : vector<8x1xf32> to vector<8x112xf32>
    %149 = arith.subf %95, %148 : vector<8x112xf32>
    %150 = vector.broadcast %141 : vector<1x112xf32> to vector<8x112xf32>
    %151 = arith.mulf %149, %150 : vector<8x112xf32>
    %152 = arith.mulf %151, %151 : vector<8x112xf32>
    %cst_50 = arith.constant dense<0.000000e+00> : vector<8xf32>
    %153 = vector.multi_reduction <add>, %152, %cst_50 [1] : vector<8x112xf32> to vector<8xf32>
    %154 = vector.shape_cast %153 : vector<8xf32> to vector<8x1xf32>
    %cst_51 = arith.constant 6.250000e-02 : f32
    %155 = vector.broadcast %cst_51 : f32 to vector<8x1xf32>
    %156 = arith.mulf %154, %155 : vector<8x1xf32>
    %cst_52 = arith.constant 9.99999974E-6 : f32
    %157 = vector.broadcast %cst_52 : f32 to vector<8x1xf32>
    %158 = arith.addf %156, %157 : vector<8x1xf32>
    %159 = math.rsqrt %158 : vector<8x1xf32>
    %160 = vector.broadcast %159 : vector<8x1xf32> to vector<8x112xf32>
    %161 = arith.mulf %151, %160 : vector<8x112xf32>
    %162 = arith.addf %140, %161 : vector<8x112xf32>
    %c0_53 = arith.constant 0 : index
    %c0_54 = arith.constant 0 : index
    %163 = vector.load %arg9[%c0_53, %c0_54] : memref<1x112xf32, #tpu.memory_space<vmem>>, vector<1x112xf32>
    %164 = vector.broadcast %163 : vector<1x112xf32> to vector<8x112xf32>
    %165 = arith.mulf %162, %164 : vector<8x112xf32>
    %c0_55 = arith.constant 0 : index
    %c0_56 = arith.constant 0 : index
    %166 = vector.load %arg10[%c0_55, %c0_56] : memref<1x112xf32, #tpu.memory_space<vmem>>, vector<1x112xf32>
    %167 = vector.broadcast %166 : vector<1x112xf32> to vector<8x112xf32>
    %168 = arith.addf %165, %167 : vector<8x112xf32>
    %169 = arith.truncf %168 : vector<8x112xf32> to vector<8x112xbf16>
    %c0_57 = arith.constant 0 : index
    %c0_58 = arith.constant 0 : index
    %170 = vector.load %arg11[%c0_57, %c0_58] : memref<112x112xbf16, #tpu.memory_space<vmem>>, vector<112x112xbf16>
    %cst_59 = arith.constant dense<0.000000e+00> : vector<8x112xf32>
    %171 = tpu.matmul %169, %170, %cst_59 {dimension_numbers = #tpu.dot_dimension_numbers<[1], [0], [0], [1], [0, 0, 1, 1], [], []>} : vector<8x112xbf16>, vector<112x112xbf16>, vector<8x112xf32> -> vector<8x112xf32>
    %cst_60 = arith.constant 3.000000e+00 : f32
    %172 = vector.broadcast %cst_60 : f32 to vector<8x112xf32>
    %173 = arith.addf %171, %172 : vector<8x112xf32>
    %cst_61 = arith.constant 0.000000e+00 : f32
    %cst_62 = arith.constant 6.000000e+00 : f32
    %174 = vector.broadcast %cst_61 : f32 to vector<8x112xf32>
    %175 = arith.maximumf %174, %173 : vector<8x112xf32>
    %176 = vector.broadcast %cst_62 : f32 to vector<8x112xf32>
    %177 = arith.minimumf %176, %175 : vector<8x112xf32>
    %178 = arith.mulf %171, %177 : vector<8x112xf32>
    %cst_63 = arith.constant 0.166666672 : f32
    %179 = vector.broadcast %cst_63 : f32 to vector<8x112xf32>
    %180 = arith.mulf %178, %179 : vector<8x112xf32>
    %181 = arith.truncf %180 : vector<8x112xf32> to vector<8x112xbf16>
    %c0_64 = arith.constant 0 : index
    %c0_65 = arith.constant 0 : index
    %182 = vector.load %arg12[%c0_64, %c0_65] : memref<112x112xbf16, #tpu.memory_space<vmem>>, vector<112x112xbf16>
    %cst_66 = arith.constant dense<0.000000e+00> : vector<8x112xf32>
    %183 = tpu.matmul %181, %182, %cst_66 {dimension_numbers = #tpu.dot_dimension_numbers<[1], [0], [0], [1], [0, 0, 1, 1], [], []>} : vector<8x112xbf16>, vector<112x112xbf16>, vector<8x112xf32> -> vector<8x112xf32>
    %184 = arith.addf %95, %183 : vector<8x112xf32>
    %185 = arith.truncf %184 : vector<8x112xf32> to vector<8x112xbf16>
    %c0_67 = arith.constant 0 : index
    %c0_68 = arith.constant 0 : index
    %186 = vector.load %arg13[%c0_67, %c0_68] : memref<112x28xbf16, #tpu.memory_space<vmem>>, vector<112x28xbf16>
    %cst_69 = arith.constant dense<0.000000e+00> : vector<8x28xf32>
    %187 = tpu.matmul %185, %186, %cst_69 {dimension_numbers = #tpu.dot_dimension_numbers<[1], [0], [0], [1], [0, 0, 1, 1], [], []>} : vector<8x112xbf16>, vector<112x28xbf16>, vector<8x28xf32> -> vector<8x28xf32>
    %c0_70 = arith.constant 0 : index
    %c0_71 = arith.constant 0 : index
    %188 = vector.load %arg14[%c0_70, %c0_71] : memref<1x28xf32, #tpu.memory_space<vmem>>, vector<1x28xf32>
    %189 = vector.broadcast %188 : vector<1x28xf32> to vector<8x28xf32>
    %190 = arith.addf %187, %189 : vector<8x28xf32>
    %c0_72 = arith.constant 0 : index
    %c0_73 = arith.constant 0 : index
    %191 = vector.load %arg15[%c0_72, %c0_73] : memref<8x28xf32, #tpu.memory_space<vmem>>, vector<8x28xf32>
    %c0_74 = arith.constant 0 : index
    %c0_75 = arith.constant 0 : index
    %192 = vector.load %arg16[%c0_74, %c0_75] : memref<8x28xf32, #tpu.memory_space<vmem>>, vector<8x28xf32>
    %193 = vector.shape_cast %190 : vector<8x28xf32> to vector<1x8x28xf32>
    %cst_76 = arith.constant dense<0.000000e+00> : vector<1xf32>
    %194 = vector.multi_reduction <add>, %193, %cst_76 [1, 2] : vector<1x8x28xf32> to vector<1xf32>
    %195 = vector.shape_cast %194 : vector<1xf32> to vector<1x1x1xf32>
    %196 = vector.extract %195[0, 0, 0] : f32 from vector<1x1x1xf32>
    %cst_77 = arith.constant 2.240000e+02 : f32
    %197 = arith.divf %196, %cst_77 : f32
    %198 = vector.broadcast %197 : f32 to vector<8x28xf32>
    %199 = arith.subf %190, %198 : vector<8x28xf32>
    %200 = arith.mulf %199, %199 : vector<8x28xf32>
    %201 = vector.shape_cast %200 : vector<8x28xf32> to vector<1x8x28xf32>
    %cst_78 = arith.constant dense<0.000000e+00> : vector<1xf32>
    %202 = vector.multi_reduction <add>, %201, %cst_78 [1, 2] : vector<1x8x28xf32> to vector<1xf32>
    %203 = vector.shape_cast %202 : vector<1xf32> to vector<1x1x1xf32>
    %204 = vector.extract %203[0, 0, 0] : f32 from vector<1x1x1xf32>
    %cst_79 = arith.constant 2.240000e+02 : f32
    %205 = arith.divf %204, %cst_79 : f32
    %206 = vector.broadcast %197 : f32 to vector<8x28xf32>
    %207 = arith.subf %190, %206 : vector<8x28xf32>
    %cst_80 = arith.constant 9.99999974E-6 : f32
    %208 = arith.addf %205, %cst_80 : f32
    %209 = math.rsqrt %208 : f32
    %210 = vector.broadcast %209 : f32 to vector<8x28xf32>
    %211 = arith.mulf %207, %210 : vector<8x28xf32>
    %212 = arith.mulf %211, %191 : vector<8x28xf32>
    %213 = arith.addf %212, %192 : vector<8x28xf32>
    %c0_81 = arith.constant 0 : index
    %c0_82 = arith.constant 0 : index
    %214 = vector.load %arg17[%c0_81, %c0_82] : memref<4x8xf32, #tpu.memory_space<vmem>>, vector<4x8xf32>
    %c0_83 = arith.constant 0 : index
    %c0_84 = arith.constant 0 : index
    %215 = vector.load %arg18[%c0_83, %c0_84] : memref<8x4xf32, #tpu.memory_space<vmem>>, vector<8x4xf32>
    %216 = vector.extract_strided_slice %214 {offsets = [0, 0], sizes = [4, 1], strides = [1, 1]} : vector<4x8xf32> to vector<4x1xf32>
    %217 = vector.extract_strided_slice %213 {offsets = [0, 0], sizes = [1, 28], strides = [1, 1]} : vector<8x28xf32> to vector<1x28xf32>
    %218 = vector.broadcast %216 : vector<4x1xf32> to vector<4x28xf32>
    %219 = vector.broadcast %217 : vector<1x28xf32> to vector<4x28xf32>
    %220 = arith.mulf %218, %219 : vector<4x28xf32>
    %221 = vector.extract_strided_slice %214 {offsets = [0, 1], sizes = [4, 1], strides = [1, 1]} : vector<4x8xf32> to vector<4x1xf32>
    %222 = vector.extract_strided_slice %213 {offsets = [1, 0], sizes = [1, 28], strides = [1, 1]} : vector<8x28xf32> to vector<1x28xf32>
    %223 = vector.broadcast %221 : vector<4x1xf32> to vector<4x28xf32>
    %224 = vector.broadcast %222 : vector<1x28xf32> to vector<4x28xf32>
    %225 = arith.mulf %223, %224 : vector<4x28xf32>
    %226 = arith.addf %220, %225 : vector<4x28xf32>
    %227 = vector.extract_strided_slice %214 {offsets = [0, 2], sizes = [4, 1], strides = [1, 1]} : vector<4x8xf32> to vector<4x1xf32>
    %228 = vector.extract_strided_slice %213 {offsets = [2, 0], sizes = [1, 28], strides = [1, 1]} : vector<8x28xf32> to vector<1x28xf32>
    %229 = vector.broadcast %227 : vector<4x1xf32> to vector<4x28xf32>
    %230 = vector.broadcast %228 : vector<1x28xf32> to vector<4x28xf32>
    %231 = arith.mulf %229, %230 : vector<4x28xf32>
    %232 = arith.addf %226, %231 : vector<4x28xf32>
    %233 = vector.extract_strided_slice %214 {offsets = [0, 3], sizes = [4, 1], strides = [1, 1]} : vector<4x8xf32> to vector<4x1xf32>
    %234 = vector.extract_strided_slice %213 {offsets = [3, 0], sizes = [1, 28], strides = [1, 1]} : vector<8x28xf32> to vector<1x28xf32>
    %235 = vector.broadcast %233 : vector<4x1xf32> to vector<4x28xf32>
    %236 = vector.broadcast %234 : vector<1x28xf32> to vector<4x28xf32>
    %237 = arith.mulf %235, %236 : vector<4x28xf32>
    %238 = arith.addf %232, %237 : vector<4x28xf32>
    %239 = vector.extract_strided_slice %214 {offsets = [0, 4], sizes = [4, 1], strides = [1, 1]} : vector<4x8xf32> to vector<4x1xf32>
    %240 = vector.extract_strided_slice %213 {offsets = [4, 0], sizes = [1, 28], strides = [1, 1]} : vector<8x28xf32> to vector<1x28xf32>
    %241 = vector.broadcast %239 : vector<4x1xf32> to vector<4x28xf32>
    %242 = vector.broadcast %240 : vector<1x28xf32> to vector<4x28xf32>
    %243 = arith.mulf %241, %242 : vector<4x28xf32>
    %244 = arith.addf %238, %243 : vector<4x28xf32>
    %245 = vector.extract_strided_slice %214 {offsets = [0, 5], sizes = [4, 1], strides = [1, 1]} : vector<4x8xf32> to vector<4x1xf32>
    %246 = vector.extract_strided_slice %213 {offsets = [5, 0], sizes = [1, 28], strides = [1, 1]} : vector<8x28xf32> to vector<1x28xf32>
    %247 = vector.broadcast %245 : vector<4x1xf32> to vector<4x28xf32>
    %248 = vector.broadcast %246 : vector<1x28xf32> to vector<4x28xf32>
    %249 = arith.mulf %247, %248 : vector<4x28xf32>
    %250 = arith.addf %244, %249 : vector<4x28xf32>
    %251 = vector.extract_strided_slice %214 {offsets = [0, 6], sizes = [4, 1], strides = [1, 1]} : vector<4x8xf32> to vector<4x1xf32>
    %252 = vector.extract_strided_slice %213 {offsets = [6, 0], sizes = [1, 28], strides = [1, 1]} : vector<8x28xf32> to vector<1x28xf32>
    %253 = vector.broadcast %251 : vector<4x1xf32> to vector<4x28xf32>
    %254 = vector.broadcast %252 : vector<1x28xf32> to vector<4x28xf32>
    %255 = arith.mulf %253, %254 : vector<4x28xf32>
    %256 = arith.addf %250, %255 : vector<4x28xf32>
    %257 = vector.extract_strided_slice %214 {offsets = [0, 7], sizes = [4, 1], strides = [1, 1]} : vector<4x8xf32> to vector<4x1xf32>
    %258 = vector.extract_strided_slice %213 {offsets = [7, 0], sizes = [1, 28], strides = [1, 1]} : vector<8x28xf32> to vector<1x28xf32>
    %259 = vector.broadcast %257 : vector<4x1xf32> to vector<4x28xf32>
    %260 = vector.broadcast %258 : vector<1x28xf32> to vector<4x28xf32>
    %261 = arith.mulf %259, %260 : vector<4x28xf32>
    %262 = arith.addf %256, %261 : vector<4x28xf32>
    %cst_85 = arith.constant 3.000000e+00 : f32
    %263 = vector.broadcast %cst_85 : f32 to vector<4x28xf32>
    %264 = arith.addf %262, %263 : vector<4x28xf32>
    %cst_86 = arith.constant 0.000000e+00 : f32
    %cst_87 = arith.constant 6.000000e+00 : f32
    %265 = vector.broadcast %cst_86 : f32 to vector<4x28xf32>
    %266 = arith.maximumf %265, %264 : vector<4x28xf32>
    %267 = vector.broadcast %cst_87 : f32 to vector<4x28xf32>
    %268 = arith.minimumf %267, %266 : vector<4x28xf32>
    %269 = arith.mulf %262, %268 : vector<4x28xf32>
    %cst_88 = arith.constant 0.166666672 : f32
    %270 = vector.broadcast %cst_88 : f32 to vector<4x28xf32>
    %271 = arith.mulf %269, %270 : vector<4x28xf32>
    %272 = vector.extract_strided_slice %215 {offsets = [0, 0], sizes = [8, 1], strides = [1, 1]} : vector<8x4xf32> to vector<8x1xf32>
    %273 = vector.extract_strided_slice %271 {offsets = [0, 0], sizes = [1, 28], strides = [1, 1]} : vector<4x28xf32> to vector<1x28xf32>
    %274 = vector.broadcast %272 : vector<8x1xf32> to vector<8x28xf32>
    %275 = vector.broadcast %273 : vector<1x28xf32> to vector<8x28xf32>
    %276 = arith.mulf %274, %275 : vector<8x28xf32>
    %277 = vector.extract_strided_slice %215 {offsets = [0, 1], sizes = [8, 1], strides = [1, 1]} : vector<8x4xf32> to vector<8x1xf32>
    %278 = vector.extract_strided_slice %271 {offsets = [1, 0], sizes = [1, 28], strides = [1, 1]} : vector<4x28xf32> to vector<1x28xf32>
    %279 = vector.broadcast %277 : vector<8x1xf32> to vector<8x28xf32>
    %280 = vector.broadcast %278 : vector<1x28xf32> to vector<8x28xf32>
    %281 = arith.mulf %279, %280 : vector<8x28xf32>
    %282 = arith.addf %276, %281 : vector<8x28xf32>
    %283 = vector.extract_strided_slice %215 {offsets = [0, 2], sizes = [8, 1], strides = [1, 1]} : vector<8x4xf32> to vector<8x1xf32>
    %284 = vector.extract_strided_slice %271 {offsets = [2, 0], sizes = [1, 28], strides = [1, 1]} : vector<4x28xf32> to vector<1x28xf32>
    %285 = vector.broadcast %283 : vector<8x1xf32> to vector<8x28xf32>
    %286 = vector.broadcast %284 : vector<1x28xf32> to vector<8x28xf32>
    %287 = arith.mulf %285, %286 : vector<8x28xf32>
    %288 = arith.addf %282, %287 : vector<8x28xf32>
    %289 = vector.extract_strided_slice %215 {offsets = [0, 3], sizes = [8, 1], strides = [1, 1]} : vector<8x4xf32> to vector<8x1xf32>
    %290 = vector.extract_strided_slice %271 {offsets = [3, 0], sizes = [1, 28], strides = [1, 1]} : vector<4x28xf32> to vector<1x28xf32>
    %291 = vector.broadcast %289 : vector<8x1xf32> to vector<8x28xf32>
    %292 = vector.broadcast %290 : vector<1x28xf32> to vector<8x28xf32>
    %293 = arith.mulf %291, %292 : vector<8x28xf32>
    %294 = arith.addf %288, %293 : vector<8x28xf32>
    %295 = arith.addf %190, %294 : vector<8x28xf32>
    %c0_89 = arith.constant 0 : index
    %c0_90 = arith.constant 0 : index
    %296 = vector.load %arg19[%c0_89, %c0_90] : memref<1x28xf32, #tpu.memory_space<vmem>>, vector<1x28xf32>
    %297 = vector.broadcast %296 : vector<1x28xf32> to vector<8x28xf32>
    %298 = arith.mulf %190, %297 : vector<8x28xf32>
    %c0_91 = arith.constant 0 : index
    %c0_92 = arith.constant 0 : index
    %299 = vector.load %arg20[%c0_91, %c0_92] : memref<1x28xf32, #tpu.memory_space<vmem>>, vector<1x28xf32>
    %300 = vector.broadcast %299 : vector<1x28xf32> to vector<8x28xf32>
    %301 = arith.mulf %295, %300 : vector<8x28xf32>
    %302 = arith.addf %298, %301 : vector<8x28xf32>
    %cst_93 = arith.constant dense<0.000000e+00> : vector<8xf32>
    %303 = vector.multi_reduction <add>, %302, %cst_93 [1] : vector<8x28xf32> to vector<8xf32>
    %304 = vector.shape_cast %303 : vector<8xf32> to vector<8x1xf32>
    %c0_94 = arith.constant 0 : index
    %c0_95 = arith.constant 0 : index
    %305 = vector.load %arg21[%c0_94, %c0_95] : memref<1x1xf32, #tpu.memory_space<vmem>>, vector<1x1xf32>
    %306 = vector.broadcast %305 : vector<1x1xf32> to vector<8x1xf32>
    %307 = arith.addf %304, %306 : vector<8x1xf32>
    %c0_96 = arith.constant 0 : index
    %c0_97 = arith.constant 0 : index
    %308 = vector.load %arg22[%c0_96, %c0_97] : memref<8x1xf32, #tpu.memory_space<vmem>>, vector<8x1xf32>
    tpu.vector_store %arg22[%c0_96, %c0_97], %307 {strides = array<i32>} : memref<8x1xf32, #tpu.memory_space<vmem>>, vector<8x1xf32>,
    return
  }
  func.func @transform_0(%arg0: i32) -> (i32, i32) {
    %c0_i32 = arith.constant 0 : i32
    %c0_i32_0 = arith.constant 0 : i32
    %c0_i32_1 = arith.constant 0 : i32
    return %c0_i32, %c0_i32_0 : i32, i32
  }
  func.func @transform_1(%arg0: i32) -> (i32, i32) {
    %c0_i32 = arith.constant 0 : i32
    %c0_i32_0 = arith.constant 0 : i32
    %c0_i32_1 = arith.constant 0 : i32
    return %c0_i32, %c0_i32_0 : i32, i32
  }
  func.func @transform_2(%arg0: i32) -> (i32, i32) {
    %c0_i32 = arith.constant 0 : i32
    %c0_i32_0 = arith.constant 0 : i32
    %c0_i32_1 = arith.constant 0 : i32
    return %c0_i32, %c0_i32_0 : i32, i32
  }
  func.func @transform_3(%arg0: i32) -> (i32, i32) {
    %c0_i32 = arith.constant 0 : i32
    %c0_i32_0 = arith.constant 0 : i32
    %c0_i32_1 = arith.constant 0 : i32
    return %c0_i32, %c0_i32_0 : i32, i32
  }
  func.func @transform_4(%arg0: i32) -> (i32, i32) {
    %c0_i32 = arith.constant 0 : i32
    %c0_i32_0 = arith.constant 0 : i32
    %c0_i32_1 = arith.constant 0 : i32
    return %c0_i32, %c0_i32_0 : i32, i32
  }
  func.func @transform_5(%arg0: i32) -> (i32, i32) {
    %c0_i32 = arith.constant 0 : i32
    %c0_i32_0 = arith.constant 0 : i32
    %c0_i32_1 = arith.constant 0 : i32
    return %c0_i32, %c0_i32_0 : i32, i32
  }
  func.func @transform_6(%arg0: i32) -> (i32, i32) {
    %c0_i32 = arith.constant 0 : i32
    %c0_i32_0 = arith.constant 0 : i32
    %c0_i32_1 = arith.constant 0 : i32
    return %c0_i32, %c0_i32_0 : i32, i32
  }
  func.func @transform_7(%arg0: i32) -> (i32, i32) {
    %c0_i32 = arith.constant 0 : i32
    %c0_i32_0 = arith.constant 0 : i32
    %c0_i32_1 = arith.constant 0 : i32
    return %c0_i32, %c0_i32_0 : i32, i32
  }
  func.func @transform_8(%arg0: i32) -> (i32, i32) {
    %c0_i32 = arith.constant 0 : i32
    %c0_i32_0 = arith.constant 0 : i32
    %c0_i32_1 = arith.constant 0 : i32
    return %c0_i32, %c0_i32_0 : i32, i32
  }
  func.func @transform_9(%arg0: i32) -> (i32, i32) {
    %c0_i32 = arith.constant 0 : i32
    %c0_i32_0 = arith.constant 0 : i32
    %c0_i32_1 = arith.constant 0 : i32
    return %c0_i32, %c0_i32_0 : i32, i32
  }
  func.func @transform_10(%arg0: i32) -> (i32, i32) {
    %c0_i32 = arith.constant 0 : i32
    %c0_i32_0 = arith.constant 0 : i32
    %c0_i32_1 = arith.constant 0 : i32
    return %c0_i32, %c0_i32_0 : i32, i32
  }
  func.func @transform_11(%arg0: i32) -> (i32, i32) {
    %c0_i32 = arith.constant 0 : i32
    %c0_i32_0 = arith.constant 0 : i32
    %c0_i32_1 = arith.constant 0 : i32
    return %c0_i32, %c0_i32_0 : i32, i32
  }
  func.func @transform_12(%arg0: i32) -> (i32, i32) {
    %c0_i32 = arith.constant 0 : i32
    %c0_i32_0 = arith.constant 0 : i32
    %c0_i32_1 = arith.constant 0 : i32
    return %c0_i32, %c0_i32_0 : i32, i32
  }
  func.func @transform_13(%arg0: i32) -> (i32, i32) {
    %c0_i32 = arith.constant 0 : i32
    %c0_i32_0 = arith.constant 0 : i32
    %c0_i32_1 = arith.constant 0 : i32
    return %c0_i32, %c0_i32_0 : i32, i32
  }
  func.func @transform_14(%arg0: i32) -> (i32, i32) {
    %c0_i32 = arith.constant 0 : i32
    %c0_i32_0 = arith.constant 0 : i32
    %c0_i32_1 = arith.constant 0 : i32
    return %c0_i32, %c0_i32_0 : i32, i32
  }
  func.func @transform_15(%arg0: i32) -> (i32, i32) {
    %c0_i32 = arith.constant 0 : i32
    %c0_i32_0 = arith.constant 0 : i32
    %c0_i32_1 = arith.constant 0 : i32
    return %c0_i32, %c0_i32_0 : i32, i32
  }
  func.func @transform_16(%arg0: i32) -> (i32, i32) {
    %c0_i32 = arith.constant 0 : i32
    %c0_i32_0 = arith.constant 0 : i32
    %c0_i32_1 = arith.constant 0 : i32
    return %c0_i32, %c0_i32_0 : i32, i32
  }
  func.func @transform_17(%arg0: i32) -> (i32, i32) {
    %c0_i32 = arith.constant 0 : i32
    %c0_i32_0 = arith.constant 0 : i32
    %c0_i32_1 = arith.constant 0 : i32
    return %c0_i32, %c0_i32_0 : i32, i32
  }
  func.func @transform_18(%arg0: i32) -> (i32, i32) {
    %c0_i32 = arith.constant 0 : i32
    %c0_i32_0 = arith.constant 0 : i32
    %c0_i32_1 = arith.constant 0 : i32
    return %c0_i32, %c0_i32_0 : i32, i32
  }
  func.func @transform_19(%arg0: i32) -> (i32, i32) {
    %c0_i32 = arith.constant 0 : i32
    %c0_i32_0 = arith.constant 0 : i32
    %c0_i32_1 = arith.constant 0 : i32
    return %c0_i32, %c0_i32_0 : i32, i32
  }
  func.func @transform_20(%arg0: i32) -> (i32, i32) {
    %c0_i32 = arith.constant 0 : i32
    %c0_i32_0 = arith.constant 0 : i32
    %c0_i32_1 = arith.constant 0 : i32
    return %c0_i32, %c0_i32_0 : i32, i32
  }
  func.func @transform_21(%arg0: i32) -> (i32, i32) {
    %c0_i32 = arith.constant 0 : i32
    %c0_i32_0 = arith.constant 0 : i32
    %c0_i32_1 = arith.constant 0 : i32
    return %c0_i32, %c0_i32_0 : i32, i32
  }
}

</mosaic_0001>

<bundles_post_ra>
// kernel: tpu_custom_call.1
= control target key start
LH: loop header
LB: loop body
LE: loop exit
PB: predicated region body
PF: predicated region fallthrough
CT: control target
= control target key end

     0   :  { %v2495_v0 = vmov 0.0   ;;  %vm2496_vm0 = vmmov 0   ;;  %vm112_vm1 = vcmask 523264   ;;  %v156_v6 = vlaneseq  ;;  %s3219_s2 = inlined_call_operand.vmem [shape: bf16[64,112], index: 2, kind: input, shape index: {}]   ;;  %s3220_s0 = inlined_call_operand.vmem [shape: bf16[8,64], index: 0, kind: input, shape index: {}]   ;;  %s3221_s1 = inlined_call_operand.vmem [shape: f32[3,112], index: 1, kind: input, shape index: {}]   ;;  %s3222_s3 = inlined_call_operand.vmem [shape: f32[1,112], index: 3, kind: input, shape index: {}]   ;;  %s3223_s6 = inlined_call_operand.vmem [shape: bf16[112,896], index: 6, kind: input, shape index: {}]   ;;  %s3224_s7 = inlined_call_operand.vmem [shape: bf16[896,112], index: 7, kind: input, shape index: {}]   ;;  %s3225_s4 = inlined_call_operand.vmem [shape: f32[1,112], index: 4, kind: input, shape index: {}]   ;;  %s3226_s5 = inlined_call_operand.vmem [shape: f32[1,112], index: 5, kind: input, shape index: {}]   ;;  %s3227_s10 = inlined_call_operand.vmem [shape: bf16[112,112], index: 10, kind: input, shape index: {}]   ;;  %s3228_s11 = inlined_call_operand.vmem [shape: bf16[112,112], index: 11, kind: input, shape index: {}]   ;;  %s3229_s8 = inlined_call_operand.vmem [shape: f32[1,112], index: 8, kind: input, shape index: {}]   ;;  %s3230_s9 = inlined_call_operand.vmem [shape: f32[1,112], index: 9, kind: input, shape index: {}]   ;;  %s3231_s12 = inlined_call_operand.vmem [shape: bf16[112,28], index: 12, kind: input, shape index: {}]   ;;  %s3232_s13 = inlined_call_operand.vmem [shape: f32[1,28], index: 13, kind: input, shape index: {}]   ;;  %s3233_s16 = inlined_call_operand.vmem [shape: f32[4,8], index: 16, kind: input, shape index: {}]   ;;  %s3234_s17 = inlined_call_operand.vmem [shape: f32[8,4], index: 17, kind: input, shape index: {}]   ;;  %s3235_s20 = inlined_call_operand.<no memory space> [shape: f32[1,1], index: 20, kind: input, shape index: {}]   ;;  %s3236_s14 = inlined_call_operand.vmem [shape: f32[8,28], index: 14, kind: input, shape index: {}]   ;;  %s3237_s15 = inlined_call_operand.vmem [shape: f32[8,28], index: 15, kind: input, shape index: {}]   ;;  %s3238_s18 = inlined_call_operand.vmem [shape: f32[1,28], index: 18, kind: input, shape index: {}]   ;;  %s3239_s19 = inlined_call_operand.vmem [shape: f32[1,28], index: 19, kind: input, shape index: {}]   ;;  %s3240_s21 = inlined_call_operand.vmem [shape: f32[8,1], index: 21, kind: output, shape index: {}]  }
   0x1   :  { %3244 = sst [smem:[#allocation3_spill]] %s3219_s2  ;;  %2197 = vmatprep.subr.bf16.mxu0 %v2495_v0  ;;  %2205 = vmatprep.mubr.msk.bf16.mxu0 %vm2496_vm0, %v2495_v0  ;;  %vm161_vm2 = vcmask 916480   ;;  %vm1738_vm3 = vcmask 228352   ;;  %vm1932_vm4 = vcmask 7168  }
   0x2   :  { %3245 = sst [smem:[#allocation4_spill]] %s3220_s0  ;;  %v2636_v7 = vshrl.u32 %v156_v6, 7 }
   0x3   :  { %3246 = sst [smem:[#allocation5_spill]] %s3221_s1 }
   0x4   :  { %3247 = sst [smem:[#allocation6_spill]] %s3222_s3  ;;  %v2639_v8 = vsub.s32 2, %v2636_v7  ;;  %v2642_v9 = vsub.s32 0, %v2636_v7  ;;  %v2648_v11 = vsub.s32 1, %v2636_v7 }
   0x5   :  { %3248 = sst [smem:[#allocation7_spill]] %s3223_s6 }
   0x6   :  { %3249 = sst [smem:[#allocation8_spill]] %s3224_s7 }
   0x7   :  { %s3250_s26 = sld [smem:[#allocation3_spill]] }
   0x8   :  { %s3251_s22 = sld [smem:[#allocation4_spill]] }
   0x9   :  { %s3252_s24 = sld [smem:[#allocation5_spill]] }
   0xa   :  { %s3254_s28 = sld [smem:[#allocation7_spill]] }
   0xb   :  { %s3255_s27 = sld [smem:[#allocation8_spill]] }
   0xd   :  { %v2330_v1 = vld [vmem:[%s3250_s26 + $0x18] sm:$0xff]   ;;  %v2331_v2 = vld [vmem:[%s3250_s26 + $0x10] sm:$0xff]   ;;  %v2332_v3 = vld [vmem:[%s3250_s26 + $0x8] sm:$0xff]  }
   0xe   :  { %2198 = vmatpush3.bf16.msra.mxu0 %v2330_v1  ;;  %v2333_v4 = vld [vmem:[%s3250_s26] sm:$0xff]   ;;  %s3253_s26 = sld [smem:[#allocation6_spill]] }
   0xf   :  { %2199 = vmatprep.subr.bf16.mxu0 %v2495_v0  ;;  %v71_v5 = vld [vmem:[%s3251_s22] sm:$0xf] }
  0x10   :  { %v72_v10 = vld [vmem:[%s3252_s24] sm:$0x7]  ;;  %v2334_v45 = vld [vmem:[%s3254_s28 + $0x154] ss:$28 sps:$4 sm:$0xff]   ;;  %v2338_v47 = vld [vmem:[%s3254_s28 + $0x15c] ss:$28 sps:$4 sm:$0xff]  }
  0x11   :  { %v2654_v13 = vrot.slane %v72_v10, %v2639_v8  ;;  %v2657_v14 = vrot.slane %v72_v10, %v2642_v9  ;;  %v2662_v17 = vrot.slane %v72_v10, %v2648_v11  ;;  %v2336_v46 = vld [vmem:[%s3254_s28 + $0x158] ss:$28 sps:$4 sm:$0xff]   ;;  %547 = vmatprep.subr.bf16.mxu1 %v2334_v45  ;;  %v2339_v48 = vld [vmem:[%s3254_s28 + $0x150] ss:$28 sps:$4 sm:$0xff]   ;;  %v2344_v50 = vld [vmem:[%s3254_s28 + $0x124] ss:$28 sps:$4 sm:$0xff]  }
  0x12   :  { %2200 = vmatpush3.bf16.msra.mxu0 %v2331_v2  ;;  %548 = vmatpush1.bf16.msra.mxu1 %v2339_v48  ;;  %v2340_v49 = vld [vmem:[%s3254_s28 + $0x11c] ss:$28 sps:$4 sm:$0xff]   ;;  %v2346_v53 = vld [vmem:[%s3254_s28 + $0xe4] ss:$28 sps:$4 sm:$0xff]   ;;  %v2350_v54 = vld [vmem:[%s3254_s28 + $0xec] ss:$28 sps:$4 sm:$0xff]  }
  0x13   :  { %2201 = vmatprep.subr.bf16.mxu0 %v2495_v0  ;;  %v2342_v51 = vld [vmem:[%s3254_s28 + $0x120] ss:$28 sps:$4 sm:$0xff]   ;;  %v2345_v52 = vld [vmem:[%s3254_s28 + $0x118] ss:$28 sps:$4 sm:$0xff]   ;;  %549 = vmatprep.subr.bf16.mxu1 %v2340_v49  ;;  %v2348_v55 = vld [vmem:[%s3254_s28 + $0xe8] ss:$28 sps:$4 sm:$0xff]  }
  0x14   :  { %v1938_v12 = vld [vmem:[%s3253_s26] ss:$0 sm:$0xff]  ;;  %v2352_v57 = vld [vmem:[%s3254_s28 + $0xac] ss:$28 sps:$4 sm:$0xff]   ;;  %v2356_v58 = vld [vmem:[%s3254_s28 + $0xb4] ss:$28 sps:$4 sm:$0xff]  }
  0x15   :  { %v2351_v56 = vld [vmem:[%s3254_s28 + $0xe0] ss:$28 sps:$4 sm:$0xff]   ;;  %v2354_v59 = vld [vmem:[%s3254_s28 + $0xb0] ss:$28 sps:$4 sm:$0xff]   ;;  %v2357_v60 = vld [vmem:[%s3254_s28 + $0xa8] ss:$28 sps:$4 sm:$0xff]  }
  0x16   :  { %2202 = vmatpush3.bf16.msra.mxu0 %v2332_v3  ;;  %550 = vmatpush1.bf16.msra.mxu1 %v2345_v52  ;;  %v2358_v61 = vld [vmem:[%s3254_s28 + $0x74] ss:$28 sps:$4 sm:$0xff]   ;;  %v2362_v62 = vld [vmem:[%s3254_s28 + $0x7c] ss:$28 sps:$4 sm:$0xff]   ;;  %v2368_v3 = vld [vmem:[%s3254_s28 + $0x44] ss:$28 sps:$4 sm:$0xff]  }
  0x17   :  { %2203 = vmatprep.subr.bf16.mxu0 %v2495_v0  ;;  %551 = vmatprep.subr.bf16.mxu1 %v2346_v53  ;;  %v2360_v63 = vld [vmem:[%s3254_s28 + $0x78] ss:$28 sps:$4 sm:$0xff]   ;;  %v2363_v1 = vld [vmem:[%s3254_s28 + $0x70] ss:$28 sps:$4 sm:$0xff]   ;;  %v2370_v6 = vld [vmem:[%s3254_s28 + $0x4] ss:$28 sps:$4 sm:$0xff]  }
  0x18   :  { %v2364_v2 = vld [vmem:[%s3254_s28 + $0x3c] ss:$28 sps:$4 sm:$0xff]   ;;  %v2374_v10 = vld [vmem:[%s3254_s28 + $0xc] ss:$28 sps:$4 sm:$0xff]   ;;  %v2394_v53 = vld [vmem:[%s3254_s28 + $0x84] ss:$28 sps:$4 sm:$0xff]  }
  0x19   :  { %v2380_v45 = vld [vmem:[%s3254_s28 + $0x128] ss:$28 sps:$4 sm:$0xff]   ;;  %v2384_v48 = vld [vmem:[%s3254_s28 + $0xf0] ss:$28 sps:$4 sm:$0xff]   ;;  %v2387_v49 = vld [vmem:[%s3254_s28 + $0xf8] ss:$28 sps:$4 sm:$0xff]  }
  0x1a   :  { %2204 = vmatpush3.bf16.msra.mxu0 %v2333_v4  ;;  %552 = vmatpush1.bf16.msra.mxu1 %v2351_v56  ;;  %v2369_v4 = vld [vmem:[%s3254_s28 + $0x38] ss:$28 sps:$4 sm:$0xff]   ;;  %v2391_v52 = vld [vmem:[%s3254_s28 + $0xc0] ss:$28 sps:$4 sm:$0xff]   ;;  %v2398_v56 = vld [vmem:[%s3254_s28 + $0x4c] ss:$28 sps:$4 sm:$0xff]  }
  0x1b   :  { %588 = vmatprep.subr.bf16.mxu0 %v2338_v47  ;;  %553 = vmatprep.subr.bf16.mxu1 %v2352_v57  ;;  %v2386_v47 = vld [vmem:[%s3254_s28 + $0xf4] ss:$28 sps:$4 sm:$0xff]   ;;  %v2396_v57 = vld [vmem:[%s3254_s28 + $0x48] ss:$28 sps:$4 sm:$0xff]  }
  0x1d   :  { %2206 = vmatmul.mubr.msk.bf16.vlgmr.msra.gmra.mxu0 %vm112_vm1, %v71_v5  ;;  %v2366_v5 = vld [vmem:[%s3254_s28 + $0x40] ss:$28 sps:$4 sm:$0xff]  }
  0x1e   :  { %589 = vmatpush1.bf16.msra.mxu0 %v2336_v46  ;;  %554 = vmatpush1.bf16.msra.mxu1 %v2357_v60  ;;  %v2383_v46 = vld [vmem:[%s3254_s28 + $0x130] ss:$28 sps:$4 sm:$0xff]  }
  0x1f   :  { %590 = vmatprep.subr.bf16.mxu0 %v2344_v50  ;;  %555 = vmatprep.subr.bf16.mxu1 %v2358_v61  ;;  %v2390_v50 = vld [vmem:[%s3254_s28 + $0xbc] ss:$28 sps:$4 sm:$0xff]   ;;  %v2400_v60 = vld [vmem:[%s3254_s28 + $0x10] ss:$28 sps:$4 sm:$0xff]  }
  0x20   :  { %v2403_v61 = vld [vmem:[%s3254_s28 + $0x18] ss:$28 sps:$4 sm:$0xff]  }
  0x22   :  { %591 = vmatpush1.bf16.msra.mxu0 %v2342_v51  ;;  %556 = vmatpush1.bf16.msra.mxu1 %v2363_v1  ;;  %v2388_v51 = vld [vmem:[%s3254_s28 + $0xb8] ss:$28 sps:$4 sm:$0xff]  }
  0x23   :  { %592 = vmatprep.subr.bf16.mxu0 %v2350_v54  ;;  %557 = vmatprep.subr.bf16.mxu1 %v2364_v2  ;;  %v2392_v54 = vld [vmem:[%s3254_s28 + $0x80] ss:$28 sps:$4 sm:$0xff]  }
  0x24   :  { %v2406_v1 = vld [vmem:[%s3255_s27 + $0x38] sm:$0xff]  }
  0x25   :  { %v2407_v2 = vld [vmem:[%s3255_s27 + $0xb8] sm:$0xff]  }
  0x26   :  { %593 = vmatpush1.bf16.msra.mxu0 %v2348_v55  ;;  %558 = vmatpush1.bf16.msra.mxu1 %v2369_v4  ;;  %v2395_v55 = vld [vmem:[%s3254_s28 + $0x88] ss:$28 sps:$4 sm:$0xff]   ;;  %v2409_v4 = vld [vmem:[%s3255_s27 + $0xf0] sm:$0xff]  }
  0x27   :  { %594 = vmatprep.subr.bf16.mxu0 %v2356_v58  ;;  %559 = vmatprep.subr.bf16.mxu1 %v2370_v6  ;;  %v2399_v58 = vld [vmem:[%s3254_s28 + $0x50] ss:$28 sps:$4 sm:$0xff]  }
  0x28   :  { %v2411_v6 = vld [vmem:[%s3255_s27 + $0xb0] sm:$0xff]  }
  0x2a   :  { %595 = vmatpush1.bf16.msra.mxu0 %v2354_v59  ;;  %v2402_v59 = vld [vmem:[%s3254_s28 + $0x14] ss:$28 sps:$4 sm:$0xff]  }
  0x2b   :  { %596 = vmatprep.subr.bf16.mxu0 %v2362_v62  ;;  %v2404_v62 = vld [vmem:[%s3255_s27 + $0x78] sm:$0xff]  }
  0x2e   :  { %597 = vmatpush1.bf16.msra.mxu0 %v2360_v63  ;;  %v2405_v63 = vld [vmem:[%s3255_s27 + $0xf8] sm:$0xff]  }
  0x2f   :  { %598 = vmatprep.subr.bf16.mxu0 %v2368_v3  ;;  %v2408_v3 = vld [vmem:[%s3255_s27 + $0x70] sm:$0xff]  }
  0x32   :  { %599 = vmatpush1.bf16.msra.mxu0 %v2366_v5  ;;  %v2410_v5 = vld [vmem:[%s3255_s27 + $0x30] sm:$0xff]  }
  0x33   :  { %600 = vmatprep.subr.bf16.mxu0 %v2374_v10  ;;  %v2412_v10 = vld [vmem:[%s3255_s27 + $0x68] sm:$0xff]  }
  0xdd   :  { %v150_v15 = vpop.f32.mrf.mxu0 }
  0xde   :  { %v2659_v16 = vadd.f32 %v1938_v12, %v150_v15  ;;  %v2497_v12 = vmov 0   ;;  %v2372_v15 = vld [vmem:[%s3254_s28 + $0x8] ss:$28 sps:$4 sm:$0xff]  }
  0xdf   :  { %v2207_v18 = vpop.f32.mrf.mxu0  ;;  %577 = vmatprep.mubr.bf16.mxu1 %v2497_v12  ;;  %618 = vmatprep.mubr.bf16.mxu0 %v2497_v12 }
  0xe0   :  { %v201_v19 = vmul.f32 %v2654_v13, %v2659_v16  ;;  %v160_v20 = vmul.f32 %v2657_v14, %v2659_v16  ;;  %v181_v24 = vmul.f32 %v2662_v17, %v2659_v16  ;;  %v2375_v18 = vld [vmem:[%s3254_s28] ss:$28 sps:$4 sm:$0xff]   ;;  %2317 = vset.pattern.permute.xlu0 %v2497_v12  ;;  %601 = vmatpush1.bf16.msra.mxu0 %v2372_v15  ;;  %v2413_v15 = vld [vmem:[%s3255_s27 + $0xe8] sm:$0xff]  }
  0xe1   :  { %v153_v21 = vpop.f32.mrf.mxu0  ;;  %560 = vmatpush1.bf16.msra.mxu1 %v2375_v18  ;;  %2209 = vmatprep.subr.bf16.mxu0 %v2495_v0  ;;  %v2414_v18 = vld [vmem:[%s3255_s27 + $0x28] sm:$0xff]  }
  0xe2   :  { %v202_v22 = vsel %vm161_vm2, %v201_v19, 0.0  ;;  %v162_v23 = vsel %vm161_vm2, %v160_v20, 0.0  ;;  %v182_v26 = vsel %vm161_vm2, %v181_v24, 0.0  ;;  %v2378_v19 = vld [vmem:[%s3254_s28 + $0x164] ss:$28 sps:$4 sm:$0xff]  }
  0xe3   :  { %203 = vadd.xlane.f32.xlu1 %v202_v22  ;;  %163 = vadd.xlane.f32.xlu0 %v162_v23  ;;  %v2208_v25 = vpop.f32.mrf.mxu0 }
  0xe4   :  { %629 = vmatprep.subr.bf16.mxu1 %v2378_v19  ;;  %v2415_v19 = vld [vmem:[%s3255_s27 + $0xa8] sm:$0xff]  }
  0xe7   :  { %183 = vadd.xlane.f32.xlu0 %v182_v26 }
 0x16c   :  { %v204_v27 = vpop.xlane.xlu1 %203  ;;  %v164_v28 = vpop.xlane.xlu0 %163 }
 0x16d   :  { %v205_v29 = vmul.f32 0.0625, %v204_v27  ;;  %v165_v30 = vmul.f32 0.015625, %v164_v28 }
 0x16f   :  { %v206_v31 = vsub.f32 %v2659_v16, %v205_v29  ;;  %v166_v32 = vsub.f32 %v2659_v16, %v165_v30 }
 0x170   :  { %v184_v33 = vpop.xlane.xlu0 %183 }
 0x171   :  { %v185_v34 = vmul.f32 0.03125, %v184_v33  ;;  %v2676_v35 = vmul.f32 %v166_v32, %v2657_v14  ;;  %v2679_v36 = vmul.f32 %v206_v31, %v2654_v13 }
 0x173   :  { %v186_v37 = vsub.f32 %v2659_v16, %v185_v34  ;;  %v168_v38 = vmul.f32 %v2676_v35, %v2676_v35  ;;  %v208_v40 = vmul.f32 %v2679_v36, %v2679_v36 }
 0x175   :  { %v169_v39 = vsel %vm161_vm2, %v168_v38, 0.0  ;;  %v2688_v41 = vmul.f32 %v186_v37, %v2662_v17  ;;  %v209_v43 = vsel %vm161_vm2, %v208_v40, 0.0  ;;  %v1944_v38 = vld [vmem:[%s3225_s4] ss:$0 sm:$0xff] }
 0x176   :  { %170 = vadd.xlane.f32.xlu1 %v169_v39  ;;  %v1945_v40 = vld [vmem:[%s3226_s5] ss:$0 sm:$0xff] }
 0x177   :  { %v188_v42 = vmul.f32 %v2688_v41, %v2688_v41 }
 0x179   :  { %v189_v44 = vsel %vm161_vm2, %v188_v42, 0.0 }
 0x17a   :  { %210 = vadd.xlane.f32.xlu1 %v209_v43  ;;  %190 = vadd.xlane.f32.xlu0 %v189_v44  ;;  %v2382_v44 = vld [vmem:[%s3254_s28 + $0x12c] ss:$28 sps:$4 sm:$0xff]  }
 0x1ff   :  { %v171_v20 = vpop.xlane.xlu1 %170 }
 0x200   :  { %v172_v21 = vmul.f32 0.015625, %v171_v20  ;;  %v2416_v20 = vld [vmem:[%s3255_s27 + $0x60] sm:$0xff]  }
 0x202   :  { %v173_v22 = vadd.f32 1e-05, %v172_v21  ;;  %v2417_v21 = vld [vmem:[%s3255_s27 + $0xe0] sm:$0xff]  }
 0x203   :  { %v211_v23 = vpop.xlane.xlu1 %210  ;;  %v191_v24 = vpop.xlane.xlu0 %190 }
 0x204   :  { %v212_v25 = vmul.f32 0.0625, %v211_v23  ;;  %v192_v26 = vmul.f32 0.03125, %v191_v24  ;;  %2481 = vrsqrt.f32 %v173_v22  ;;  %v2418_v22 = vld [vmem:[%s3255_s27 + $0x20] sm:$0xff]   ;;  %v2420_v24 = vld [vmem:[%s3255_s27 + $0x58] sm:$0xff]  }
 0x205   :  { %v2419_v23 = vld [vmem:[%s3255_s27 + $0xa0] sm:$0xff]  }
 0x206   :  { %v213_v27 = vadd.f32 1e-05, %v212_v25  ;;  %v193_v28 = vadd.f32 1e-05, %v192_v26  ;;  %v2421_v25 = vld [vmem:[%s3255_s27 + $0xd8] sm:$0xff]  }
 0x207   :  { %v2422_v26 = vld [vmem:[%s3255_s27 + $0x18] sm:$0xff]  }
 0x208   :  { %2483 = vrsqrt.f32 %v213_v27  ;;  %v2423_v27 = vld [vmem:[%s3255_s27 + $0x98] sm:$0xff]  }
 0x209   :  { %2485 = vrsqrt.f32 %v193_v28  ;;  %v2424_v28 = vld [vmem:[%s3255_s27 + $0x50] sm:$0xff]  }
 0x211   :  { %v2482_v29 = vpop.eup %2481 }
 0x212   :  { %v175_v32 = vmul.f32 %v2482_v29, %v2676_v35  ;;  %v2376_v35 = vld [vmem:[%s3254_s28 + $0x160] ss:$28 sps:$4 sm:$0xff]   ;;  %v2425_v29 = vld [vmem:[%s3255_s27 + $0xd0] sm:$0xff]  }
 0x215   :  { %v2484_v30 = vpop.eup %2483 }
 0x216   :  { %v2486_v31 = vpop.eup %2485  ;;  %v215_v37 = vmul.f32 %v2484_v30, %v2679_v36  ;;  %v2426_v30 = vld [vmem:[%s3255_s27 + $0x10] sm:$0xff]  }
 0x217   :  { %v195_v33 = vmul.f32 %v2486_v31, %v2688_v41  ;;  %v2379_v41 = vld [vmem:[%s3254_s28 + $0x168] ss:$28 sps:$4 sm:$0xff]   ;;  %v2427_v31 = vld [vmem:[%s3255_s27 + $0x90] sm:$0xff]  }
 0x219   :  { %v196_v34 = vadd.f32 %v195_v33, %v175_v32  ;;  %v2428_v32 = vld [vmem:[%s3255_s27 + $0x48] sm:$0xff]  }
 0x21a   :  { %v2429_v33 = vld [vmem:[%s3255_s27 + $0xc8] sm:$0xff]  }
 0x21b   :  { %v216_v39 = vadd.f32 %v215_v37, %v196_v34  ;;  %v2430_v34 = vld [vmem:[%s3255_s27 + $0x8] sm:$0xff]  }
 0x21c   :  { %v2431_v37 = vld [vmem:[%s3255_s27 + $0x88] sm:$0xff]  }
 0x21d   :  { %v224_v42 = vmul.f32 %v1944_v38, %v216_v39  ;;  %v2432_v38 = vld [vmem:[%s3255_s27 + $0x40] sm:$0xff]  }
 0x21e   :  { %v2433_v39 = vld [vmem:[%s3255_s27 + $0xc0] sm:$0xff]  }
 0x21f   :  { %v232_v43 = vadd.f32 %v1945_v40, %v224_v42  ;;  %v2434_v40 = vld [vmem:[%s3255_s27] sm:$0xff]  }
 0x220   :  { %v2435_v42 = vld [vmem:[%s3255_s27 + $0x80] sm:$0xff]  }
 0x221   :  { %v233_v36 = vpack.c.bf16 %v232_v43, %v232_v43  ;;  %v2436_v43 = vld [vmem:[%s3255_s27 + $0x178] sm:$0xff]  }
 0x223   :  { %1995 = vmatmul.mubr.msk.bf16.vlgmr.msra.gmra.mxu1 %vm161_vm2, %v233_v36  ;;  %1996 = vmatmul.mubr.msk.bf16.vlgmr.msra.gmra.mxu0 %vm161_vm2, %v233_v36 }
 0x224   :  { %630 = vmatpush1.bf16.msra.mxu1 %v2376_v35  ;;  %2210 = vmatpush3.bf16.msra.mxu0 %v2379_v41 }
 0x225   :  { %631 = vmatprep.subr.bf16.mxu1 %v2382_v44  ;;  %2211 = vmatprep.subr.bf16.mxu0 %v2495_v0 }
 0x226   :  { %659 = vmatprep.mubr.bf16.mxu1 %v2497_v12  ;;  %2223 = vmatprep.mubr.msk.bf16.mxu0 %vm2496_vm0, %v2495_v0 }
 0x228   :  { %632 = vmatpush1.bf16.msra.mxu1 %v2380_v45  ;;  %2212 = vmatpush3.bf16.msra.mxu0 %v2383_v46 }
 0x229   :  { %633 = vmatprep.subr.bf16.mxu1 %v2386_v47  ;;  %2213 = vmatprep.subr.bf16.mxu0 %v2495_v0 }
 0x22c   :  { %634 = vmatpush1.bf16.msra.mxu1 %v2384_v48  ;;  %2214 = vmatpush3.bf16.msra.mxu0 %v2387_v49 }
 0x22d   :  { %635 = vmatprep.subr.bf16.mxu1 %v2390_v50  ;;  %2215 = vmatprep.subr.bf16.mxu0 %v2495_v0 }
 0x230   :  { %636 = vmatpush1.bf16.msra.mxu1 %v2388_v51  ;;  %2216 = vmatpush3.bf16.msra.mxu0 %v2391_v52 }
 0x231   :  { %637 = vmatprep.subr.bf16.mxu1 %v2394_v53  ;;  %2217 = vmatprep.subr.bf16.mxu0 %v2495_v0 }
 0x234   :  { %638 = vmatpush1.bf16.msra.mxu1 %v2392_v54  ;;  %2218 = vmatpush3.bf16.msra.mxu0 %v2395_v55 }
 0x235   :  { %639 = vmatprep.subr.bf16.mxu1 %v2398_v56  ;;  %2219 = vmatprep.subr.bf16.mxu0 %v2495_v0 }
 0x238   :  { %640 = vmatpush1.bf16.msra.mxu1 %v2396_v57  ;;  %2220 = vmatpush3.bf16.msra.mxu0 %v2399_v58 }
 0x239   :  { %641 = vmatprep.subr.bf16.mxu1 %v2402_v59  ;;  %2221 = vmatprep.subr.bf16.mxu0 %v2495_v0 }
 0x23c   :  { %642 = vmatpush1.bf16.msra.mxu1 %v2400_v60  ;;  %2222 = vmatpush3.bf16.msra.mxu0 %v2403_v61 }
 0x23d   :  { %2098 = vmatprep.subr.bf16.mxu1 %v2404_v62  ;;  %2120 = vmatprep.subr.bf16.mxu0 %v2405_v63 }
 0x23f   :  { %1997 = vmatmul.mubr.msk.bf16.vlgmr.msra.gmra.mxu1 %vm161_vm2, %v233_v36  ;;  %2224 = vmatmul.mubr.msk.bf16.vlgmr.msra.gmra.mxu0 %vm161_vm2, %v233_v36 }
 0x240   :  { %2099 = vmatpush3.bf16.msra.mxu1 %v2406_v1  ;;  %2121 = vmatpush3.bf16.msra.mxu0 %v2407_v2 }
 0x241   :  { %2100 = vmatprep.subr.bf16.mxu1 %v2408_v3  ;;  %2122 = vmatprep.subr.bf16.mxu0 %v2409_v4 }
 0x244   :  { %2101 = vmatpush3.bf16.msra.mxu1 %v2410_v5  ;;  %2123 = vmatpush3.bf16.msra.mxu0 %v2411_v6 }
 0x245   :  { %2102 = vmatprep.subr.bf16.mxu1 %v2412_v10  ;;  %2124 = vmatprep.subr.bf16.mxu0 %v2413_v15  ;;  %v2437_v15 = vld [vmem:[%s3255_s27 + $0x138] sm:$0xff]  }
 0x248   :  { %2103 = vmatpush3.bf16.msra.mxu1 %v2414_v18  ;;  %2125 = vmatpush3.bf16.msra.mxu0 %v2415_v19  ;;  %v2438_v18 = vld [vmem:[%s3255_s27 + $0x1b8] sm:$0xff]  }
 0x249   :  { %2104 = vmatprep.subr.bf16.mxu1 %v2416_v20  ;;  %2126 = vmatprep.subr.bf16.mxu0 %v2417_v21  ;;  %v2439_v21 = vld [vmem:[%s3255_s27 + $0x170] sm:$0xff]  }
 0x24c   :  { %2105 = vmatpush3.bf16.msra.mxu1 %v2418_v22  ;;  %2127 = vmatpush3.bf16.msra.mxu0 %v2419_v23  ;;  %v2440_v22 = vld [vmem:[%s3255_s27 + $0x130] sm:$0xff]  }
 0x24d   :  { %2106 = vmatprep.subr.bf16.mxu1 %v2420_v24  ;;  %2128 = vmatprep.subr.bf16.mxu0 %v2421_v25  ;;  %v2441_v23 = vld [vmem:[%s3255_s27 + $0x1b0] sm:$0xff]   ;;  %v2442_v24 = vld [vmem:[%s3255_s27 + $0x168] sm:$0xff]  }
 0x24e   :  { %v2443_v25 = vld [vmem:[%s3255_s27 + $0x128] sm:$0xff]  }
 0x250   :  { %2107 = vmatpush3.bf16.msra.mxu1 %v2422_v26  ;;  %2129 = vmatpush3.bf16.msra.mxu0 %v2423_v27  ;;  %v2444_v26 = vld [vmem:[%s3255_s27 + $0x1a8] sm:$0xff]   ;;  %v2445_v27 = vld [vmem:[%s3255_s27 + $0x160] sm:$0xff]  }
 0x251   :  { %2108 = vmatprep.subr.bf16.mxu1 %v2424_v28  ;;  %2130 = vmatprep.subr.bf16.mxu0 %v2425_v29  ;;  %v2446_v28 = vld [vmem:[%s3255_s27 + $0x120] sm:$0xff]  }
 0x252   :  { %v2447_v29 = vld [vmem:[%s3255_s27 + $0x1a0] sm:$0xff]  }
 0x254   :  { %2109 = vmatpush3.bf16.msra.mxu1 %v2426_v30  ;;  %2131 = vmatpush3.bf16.msra.mxu0 %v2427_v31  ;;  %v2448_v30 = vld [vmem:[%s3255_s27 + $0x158] sm:$0xff]  }
 0x255   :  { %2110 = vmatprep.subr.bf16.mxu1 %v2428_v32  ;;  %2132 = vmatprep.subr.bf16.mxu0 %v2429_v33 }
 0x258   :  { %2111 = vmatpush3.bf16.msra.mxu1 %v2430_v34  ;;  %2133 = vmatpush3.bf16.msra.mxu0 %v2431_v37  ;;  %v2449_v37 = vld [vmem:[%s3255_s27 + $0x118] sm:$0xff]  }
 0x259   :  { %2112 = vmatprep.subr.bf16.mxu1 %v2432_v38  ;;  %2134 = vmatprep.subr.bf16.mxu0 %v2433_v39  ;;  %v2450_v38 = vld [vmem:[%s3255_s27 + $0x198] sm:$0xff]  }
 0x25c   :  { %2113 = vmatpush3.bf16.msra.mxu1 %v2434_v40  ;;  %2135 = vmatpush3.bf16.msra.mxu0 %v2435_v42  ;;  %v2451_v42 = vld [vmem:[%s3255_s27 + $0x150] sm:$0xff]  }
 0x25d   :  { %2227 = vmatprep.subr.bf16.mxu0 %v2495_v0  ;;  %2142 = vmatprep.subr.bf16.mxu1 %v2436_v43 }
 0x2e3   :  { %v579_v35 = vpop.f32.mrf.mxu1  ;;  %v620_v41 = vpop.f32.mrf.mxu0 }
 0x2e4   :  { %v708_v36 = vadd.f32 3.0, %v579_v35  ;;  %v710_v44 = vadd.f32 3.0, %v620_v41 }
 0x2e5   :  { %v581_v45 = vpop.f32.mrf.mxu1  ;;  %v622_v46 = vpop.f32.mrf.mxu0 }
 0x2e6   :  { %v715_v47 = vmax.f32 %v708_v36, 0.0  ;;  %v717_v48 = vmax.f32 %v710_v44, 0.0  ;;  %v709_v49 = vadd.f32 3.0, %v581_v45  ;;  %v711_v50 = vadd.f32 3.0, %v622_v46 }
 0x2e7   :  { %v583_v51 = vpop.f32.mrf.mxu1  ;;  %v624_v52 = vpop.f32.mrf.mxu0 }
 0x2e8   :  { %v722_v53 = vmin.f32 %v715_v47, 6.0  ;;  %v724_v54 = vmin.f32 %v717_v48, 6.0  ;;  %v716_v55 = vmax.f32 %v709_v49, 0.0  ;;  %v718_v56 = vmax.f32 %v711_v50, 0.0  ;;  %v2453_v47 = vld [vmem:[%s3255_s27 + $0x190] sm:$0xff]   ;;  %v2454_v52 = vld [vmem:[%s3255_s27 + $0x148] sm:$0xff]  }
 0x2e9   :  { %v584_v57 = vpop.f32.mrf.mxu1  ;;  %v625_v58 = vpop.f32.mrf.mxu0 }
 0x2ea   :  { %v729_v59 = vmul.f32 %v722_v53, %v579_v35  ;;  %v731_v60 = vmul.f32 %v724_v54, %v620_v41  ;;  %v723_v61 = vmin.f32 %v716_v55, 6.0  ;;  %v725_v62 = vmin.f32 %v718_v56, 6.0  ;;  %v2455_v55 = vld [vmem:[%s3255_s27 + $0x108] sm:$0xff]  }
 0x2eb   :  { %v2456_v56 = vld [vmem:[%s3255_s27 + $0x188] sm:$0xff]  }
 0x2ec   :  { %v730_v63 = vmul.f32 %v723_v61, %v581_v45  ;;  %v732_v1 = vmul.f32 %v725_v62, %v622_v46  ;;  %v736_v2 = vmul.f32 0.16666667, %v729_v59  ;;  %v738_v3 = vmul.f32 0.16666667, %v731_v60  ;;  %v2452_v46 = vld [vmem:[%s3255_s27 + $0x110] sm:$0xff]   ;;  %v2457_v59 = vld [vmem:[%s3255_s27 + $0x140] sm:$0xff]  }
 0x2ed   :  { %v2458_v62 = vld [vmem:[%s3255_s27 + $0x100] sm:$0xff]  }
 0x2ee   :  { %v737_v4 = vmul.f32 0.16666667, %v730_v63  ;;  %v739_v5 = vmul.f32 0.16666667, %v732_v1  ;;  %v743_v19 = vpack.c.bf16 %v736_v2, %v736_v2  ;;  %v745_v20 = vpack.c.bf16 %v738_v3, %v738_v3  ;;  %v2459_v63 = vld [vmem:[%s3255_s27 + $0x180] sm:$0xff]  }
 0x2f0   :  { %v744_v6 = vpack.c.bf16 %v737_v4, %v737_v4  ;;  %v746_v10 = vpack.c.bf16 %v739_v5, %v739_v5 }
 0x2f2   :  { %1230 = vmatprep.mubr.bf16.mxu1 %v744_v6  ;;  %1270 = vmatprep.mubr.bf16.mxu0 %v746_v10 }
 0x2f3   :  { %1231 = vmatmul.mubr.bf16.vlgmr.msra.gmra.mxu1 %v743_v19  ;;  %1271 = vmatmul.mubr.bf16.vlgmr.msra.gmra.mxu0 %v745_v20 }
 0x2f4   :  { %2143 = vmatpush3.bf16.msra.mxu1 %v2437_v15  ;;  %2228 = vmatpush3.bf16.msra.mxu0 %v2438_v18 }
 0x2f5   :  { %2144 = vmatprep.subr.bf16.mxu1 %v2439_v21  ;;  %2229 = vmatprep.subr.bf16.mxu0 %v2495_v0 }
 0x2f6   :  { %2243 = vmatprep.mubr.msk.bf16.mxu0 %vm2496_vm0, %v2495_v0 }
 0x2f8   :  { %2145 = vmatpush3.bf16.msra.mxu1 %v2440_v22  ;;  %2230 = vmatpush3.bf16.msra.mxu0 %v2441_v23 }
 0x2f9   :  { %2146 = vmatprep.subr.bf16.mxu1 %v2442_v24  ;;  %2231 = vmatprep.subr.bf16.mxu0 %v2495_v0 }
 0x2fc   :  { %2147 = vmatpush3.bf16.msra.mxu1 %v2443_v25  ;;  %2232 = vmatpush3.bf16.msra.mxu0 %v2444_v26 }
 0x2fd   :  { %2148 = vmatprep.subr.bf16.mxu1 %v2445_v27  ;;  %2233 = vmatprep.subr.bf16.mxu0 %v2495_v0 }
 0x2ff   :  { %v661_v31 = vpop.f32.mrf.mxu1  ;;  %v702_v32 = vpop.f32.mrf.mxu0 }
 0x300   :  { %v712_v33 = vadd.f32 3.0, %v661_v31  ;;  %v714_v34 = vadd.f32 3.0, %v702_v32  ;;  %2149 = vmatpush3.bf16.msra.mxu1 %v2446_v28  ;;  %2234 = vmatpush3.bf16.msra.mxu0 %v2447_v29 }
 0x301   :  { %v663_v39 = vpop.f32.mrf.mxu1  ;;  %v2225_v40 = vpop.f32.mrf.mxu0  ;;  %2150 = vmatprep.subr.bf16.mxu1 %v2448_v30  ;;  %2235 = vmatprep.subr.bf16.mxu0 %v2495_v0 }
 0x302   :  { %v719_v43 = vmax.f32 %v712_v33, 0.0  ;;  %v721_v35 = vmax.f32 %v714_v34, 0.0  ;;  %v713_v41 = vadd.f32 3.0, %v663_v39 }
 0x303   :  { %v665_v36 = vpop.f32.mrf.mxu1  ;;  %v705_v44 = vpop.f32.mrf.mxu0 }
 0x304   :  { %v720_v45 = vmax.f32 %v713_v41, 0.0  ;;  %2151 = vmatpush3.bf16.msra.mxu1 %v2449_v37  ;;  %2236 = vmatpush3.bf16.msra.mxu0 %v2450_v38  ;;  %v726_v48 = vmin.f32 %v719_v43, 6.0  ;;  %v728_v49 = vmin.f32 %v721_v35, 6.0 }
 0x305   :  { %v666_v50 = vpop.f32.mrf.mxu1  ;;  %v2226_v51 = vpop.f32.mrf.mxu0  ;;  %2152 = vmatprep.subr.bf16.mxu1 %v2451_v42  ;;  %2237 = vmatprep.subr.bf16.mxu0 %v2495_v0 }
 0x306   :  { %v727_v53 = vmin.f32 %v720_v45, 6.0  ;;  %v733_v57 = vmul.f32 %v726_v48, %v661_v31  ;;  %v735_v58 = vmul.f32 %v728_v49, %v702_v32 }
 0x308   :  { %v734_v54 = vmul.f32 %v727_v53, %v663_v39  ;;  %2153 = vmatpush3.bf16.msra.mxu1 %v2452_v46  ;;  %2238 = vmatpush3.bf16.msra.mxu0 %v2453_v47  ;;  %v740_v1 = vmul.f32 0.16666667, %v733_v57  ;;  %v742_v2 = vmul.f32 0.16666667, %v735_v58 }
 0x309   :  { %2154 = vmatprep.subr.bf16.mxu1 %v2454_v52  ;;  %2239 = vmatprep.subr.bf16.mxu0 %v2495_v0 }
 0x30a   :  { %v741_v60 = vmul.f32 0.16666667, %v734_v54  ;;  %v747_v3 = vpack.c.bf16 %v740_v1, %v740_v1  ;;  %v749_v4 = vpack.c.bf16 %v742_v2, %v742_v2  ;;  %v2467_v1 = vld [vmem:[%s3228_s11 + $0x30] sm:$0xff]   ;;  %v2468_v2 = vld [vmem:[%s3228_s11 + $0x28] sm:$0xff]  }
 0x30c   :  { %v748_v61 = vpack.c.bf16 %v741_v60, %v741_v60  ;;  %2155 = vmatpush3.bf16.msra.mxu1 %v2455_v55  ;;  %2240 = vmatpush3.bf16.msra.mxu0 %v2456_v56  ;;  %v2463_v60 = vld [vmem:[%s3227_s10 + $0x18] sm:$0xff]  }
 0x30d   :  { %2156 = vmatprep.subr.bf16.mxu1 %v2457_v59  ;;  %2241 = vmatprep.subr.bf16.mxu0 %v2495_v0  ;;  %v2461_v59 = vld [vmem:[%s3227_s10 + $0x28] sm:$0xff]  }
 0x30e   :  { %1310 = vmatprep.mubr.bf16.mxu1 %v748_v61  ;;  %v2464_v61 = vld [vmem:[%s3227_s10 + $0x10] sm:$0xff]  }
 0x310   :  { %2157 = vmatpush3.bf16.msra.mxu1 %v2458_v62  ;;  %2242 = vmatpush3.bf16.msra.mxu0 %v2459_v63  ;;  %v2465_v62 = vld [vmem:[%s3227_s10 + $0x8] sm:$0xff]   ;;  %v2466_v63 = vld [vmem:[%s3227_s10] sm:$0xff]  }
 0x311   :  { %2247 = vmatprep.subr.bf16.mxu1 %v2495_v0  ;;  %2265 = vmatprep.subr.bf16.mxu0 %v2495_v0 }
 0x313   :  { %1311 = vmatmul.mubr.bf16.vlgmr.msra.gmra.mxu1 %v747_v3  ;;  %2244 = vmatmul.mubr.bf16.vlgmr.msra.gmra.mxu0 %v749_v4  ;;  %v2469_v3 = vld [vmem:[%s3228_s11 + $0x20] sm:$0xff]   ;;  %v2470_v4 = vld [vmem:[%s3228_s11 + $0x18] sm:$0xff]  }
 0x314   :  { %2261 = vmatprep.mubr.msk.bf16.mxu1 %vm2496_vm0, %v2495_v0  ;;  %2279 = vmatprep.mubr.msk.bf16.mxu0 %vm2496_vm0, %v2495_v0 }
 0x315   :  { %2266 = vmatpush3.bf16.msra.mxu0 %v2467_v1  ;;  %v2498_v1 = vmov 1  }
 0x316   :  { %2267 = vmatprep.subr.bf16.mxu0 %v2495_v0  ;;  %2318 = vset.pattern.permute.xlu1 %v2498_v1 }
 0x319   :  { %2268 = vmatpush3.bf16.msra.mxu0 %v2468_v2  ;;  %v1776_v2 = vld [vmem:[%s3233_s16] sm:$0xf] }
 0x31a   :  { %2269 = vmatprep.subr.bf16.mxu0 %v2495_v0 }
 0x31d   :  { %2270 = vmatpush3.bf16.msra.mxu0 %v2469_v3 }
 0x31e   :  { %2271 = vmatprep.subr.bf16.mxu0 %v2495_v0 }
 0x321   :  { %2272 = vmatpush3.bf16.msra.mxu0 %v2470_v4 }
 0x322   :  { %2273 = vmatprep.subr.bf16.mxu0 %v2495_v0 }
 0x3b3   :  { %v2114_v5 = vpop.f32.mrf.mxu1  ;;  %v2136_v6 = vpop.f32.mrf.mxu0 }
 0x3b5   :  { %v2115_v10 = vpop.f32.mrf.mxu1  ;;  %v2137_v15 = vpop.f32.mrf.mxu0 }
 0x3b6   :  { %v2116_v22 = vadd.f32 %v2115_v10, %v2114_v5  ;;  %v2138_v23 = vadd.f32 %v2137_v15, %v2136_v6 }
 0x3b7   :  { %v2117_v18 = vpop.f32.mrf.mxu1  ;;  %v2139_v19 = vpop.f32.mrf.mxu0 }
 0x3b8   :  { %v1273_v28 = vadd.f32 %v2138_v23, %v2116_v22 }
 0x3b9   :  { %v2118_v20 = vpop.f32.mrf.mxu1  ;;  %v2140_v21 = vpop.f32.mrf.mxu0 }
 0x3d3   :  { %v2158_v24 = vpop.f32.mrf.mxu1  ;;  %v1352_v25 = vpop.f32.mrf.mxu0 }
 0x3d5   :  { %v2159_v26 = vpop.f32.mrf.mxu1  ;;  %v2245_v27 = vpop.f32.mrf.mxu0 }
 0x3d6   :  { %v2160_v29 = vadd.f32 %v2159_v26, %v2158_v24 }
 0x3d7   :  { %v2161_v30 = vpop.f32.mrf.mxu1  ;;  %v1355_v31 = vpop.f32.mrf.mxu0 }
 0x3d8   :  { %v1313_v32 = vadd.f32 %v2160_v29, %v1273_v28  ;;  %v2055_v30 = vld [vmem:[%s3229_s8] ss:$0 sm:$0xff] }
 0x3d9   :  { %v2162_v33 = vpop.f32.mrf.mxu1  ;;  %v2246_v34 = vpop.f32.mrf.mxu0 }
 0x3da   :  { %v1353_v37 = vadd.f32 %v1352_v25, %v1313_v32  ;;  %v2056_v32 = vld [vmem:[%s3230_s9] ss:$0 sm:$0xff] }
 0x3dc   :  { %v3052_v38 = vadd.f32 %v1353_v37, %v2659_v16 }
 0x3de   :  { %v1375_v39 = vmul.f32 %v3052_v38, %v2662_v17  ;;  %v1359_v40 = vmul.f32 %v3052_v38, %v2657_v14  ;;  %v1391_v35 = vmul.f32 %v3052_v38, %v2654_v13 }
 0x3e0   :  { %v1376_v42 = vsel %vm161_vm2, %v1375_v39, 0.0  ;;  %v1360_v43 = vsel %vm161_vm2, %v1359_v40, 0.0  ;;  %v1392_v41 = vsel %vm161_vm2, %v1391_v35, 0.0  ;;  %v2471_v39 = vld [vmem:[%s3228_s11 + $0x10] sm:$0xff]   ;;  %v2472_v40 = vld [vmem:[%s3228_s11 + $0x8] sm:$0xff]  }
 0x3e1   :  { %1377 = vadd.xlane.f32.xlu1 %v1376_v42  ;;  %1361 = vadd.xlane.f32.xlu0 %v1360_v43  ;;  %v2473_v42 = vld [vmem:[%s3228_s11] sm:$0xff]   ;;  %v2474_v43 = vld [vmem:[%s3231_s12 + $0x30] sm:$0xff]   ;;  %v2475_v35 = vld [vmem:[%s3231_s12 + $0x28] sm:$0xff]  }
 0x3e2   :  { %2274 = vmatpush3.bf16.msra.mxu0 %v2471_v39 }
 0x3e3   :  { %2275 = vmatprep.subr.bf16.mxu0 %v2495_v0 }
 0x3e5   :  { %1393 = vadd.xlane.f32.xlu0 %v1392_v41  ;;  %v2476_v41 = vld [vmem:[%s3231_s12 + $0x20] sm:$0xff]  }
 0x3e6   :  { %2276 = vmatpush3.bf16.msra.mxu0 %v2472_v40  ;;  %v26_v40 = vstv %s3235_s20 }
 0x3e7   :  { %2277 = vmatprep.subr.bf16.mxu0 %v2495_v0  ;;  %27 = vst [vmem:[#allocation2] sm:$0x1] %v26_v40 }
 0x3ea   :  { %2278 = vmatpush3.bf16.msra.mxu0 %v2473_v42 }
 0x46a   :  { %v1378_v16 = vpop.xlane.xlu1 %1377  ;;  %v1362_v36 = vpop.xlane.xlu0 %1361 }
 0x46b   :  { %v1379_v44 = vmul.f32 0.03125, %v1378_v16  ;;  %v1363_v45 = vmul.f32 0.015625, %v1362_v36  ;;  %v2477_v16 = vld [vmem:[%s3231_s12 + $0x18] sm:$0xff]   ;;  %v2478_v36 = vld [vmem:[%s3231_s12 + $0x10] sm:$0xff]  }
 0x46d   :  { %v1380_v46 = vsub.f32 %v3052_v38, %v1379_v44  ;;  %v1364_v47 = vsub.f32 %v3052_v38, %v1363_v45  ;;  %v2479_v44 = vld [vmem:[%s3231_s12 + $0x8] sm:$0xff]  }
 0x46e   :  { %v1394_v48 = vpop.xlane.xlu0 %1393 }
 0x46f   :  { %v1395_v49 = vmul.f32 0.0625, %v1394_v48  ;;  %v3066_v50 = vmul.f32 %v1380_v46, %v2662_v17  ;;  %v1365_v51 = vmul.f32 %v1364_v47, %v2657_v14  ;;  %v2460_v14 = vld [vmem:[%s3227_s10 + $0x30] sm:$0xff]  }
 0x470   :  { %2248 = vmatpush3.bf16.msra.mxu1 %v2460_v14 }
 0x471   :  { %v1396_v52 = vsub.f32 %v3052_v38, %v1395_v49  ;;  %v1382_v53 = vmul.f32 %v3066_v50, %v3066_v50  ;;  %v1366_v54 = vmul.f32 %v1365_v51, %v1365_v51  ;;  %2249 = vmatprep.subr.bf16.mxu1 %v2495_v0 }
 0x473   :  { %v1383_v55 = vsel %vm161_vm2, %v1382_v53, 0.0  ;;  %v1367_v56 = vsel %vm161_vm2, %v1366_v54, 0.0  ;;  %v1397_v57 = vmul.f32 %v1396_v52, %v2654_v13  ;;  %v2462_v13 = vld [vmem:[%s3227_s10 + $0x20] sm:$0xff]  }
 0x474   :  { %1384 = vadd.xlane.f32.xlu0 %v1383_v55  ;;  %1368 = vadd.xlane.f32.xlu1 %v1367_v56  ;;  %v2480_v55 = vld [vmem:[%s3231_s12] sm:$0xff]  }
 0x475   :  { %v1398_v58 = vmul.f32 %v1397_v57, %v1397_v57  ;;  %2250 = vmatpush3.bf16.msra.mxu1 %v2461_v59  ;;  %v2073_v59 = vld [vmem:[%s3232_s13] ss:$0 sm:$0xff] }
 0x476   :  { %2251 = vmatprep.subr.bf16.mxu1 %v2495_v0 }
 0x477   :  { %v1399_v17 = vsel %vm161_vm2, %v1398_v58, 0.0 }
 0x478   :  { %1400 = vadd.xlane.f32.xlu1 %v1399_v17 }
 0x479   :  { %2252 = vmatpush3.bf16.msra.mxu1 %v2462_v13 }
 0x47a   :  { %2253 = vmatprep.subr.bf16.mxu1 %v2495_v0 }
 0x47d   :  { %2254 = vmatpush3.bf16.msra.mxu1 %v2463_v60 }
 0x47e   :  { %2255 = vmatprep.subr.bf16.mxu1 %v2495_v0 }
 0x481   :  { %2256 = vmatpush3.bf16.msra.mxu1 %v2464_v61 }
 0x482   :  { %2257 = vmatprep.subr.bf16.mxu1 %v2495_v0 }
 0x485   :  { %2258 = vmatpush3.bf16.msra.mxu1 %v2465_v62 }
 0x486   :  { %2259 = vmatprep.subr.bf16.mxu1 %v2495_v0 }
 0x489   :  { %2260 = vmatpush3.bf16.msra.mxu1 %v2466_v63 }
 0x48a   :  { %2283 = vmatprep.subr.bf16.mxu1 %v2495_v0 }
 0x4fd   :  { %v1369_v5 = vpop.xlane.xlu1 %1368  ;;  %v1385_v6 = vpop.xlane.xlu0 %1384 }
 0x4fe   :  { %v1370_v10 = vmul.f32 0.015625, %v1369_v5  ;;  %v1386_v15 = vmul.f32 0.03125, %v1385_v6 }
 0x500   :  { %v1371_v18 = vadd.f32 1e-05, %v1370_v10  ;;  %v1387_v19 = vadd.f32 1e-05, %v1386_v15 }
 0x501   :  { %v1401_v20 = vpop.xlane.xlu1 %1400 }
 0x502   :  { %2487 = vrsqrt.f32 %v1371_v18  ;;  %v1402_v21 = vmul.f32 0.0625, %v1401_v20 }
 0x503   :  { %2489 = vrsqrt.f32 %v1387_v19 }
 0x504   :  { %v1403_v22 = vadd.f32 1e-05, %v1402_v21 }
 0x506   :  { %2491 = vrsqrt.f32 %v1403_v22 }
 0x50f   :  { %v2488_v23 = vpop.eup %2487 }
 0x510   :  { %v2490_v24 = vpop.eup %2489  ;;  %v1373_v25 = vmul.f32 %v2488_v23, %v1365_v51  ;;  %v2499_v23 = vmov 2  }
 0x511   :  { %v1389_v26 = vmul.f32 %v2490_v24, %v3066_v50  ;;  %v1777_v24 = vld [vmem:[%s3234_s17] sm:$0xff] }
 0x513   :  { %v2492_v27 = vpop.eup %2491  ;;  %v1390_v28 = vadd.f32 %v1389_v26, %v1373_v25  ;;  %v2500_v25 = vmov 3   ;;  %v2501_v26 = vmov 4  }
 0x514   :  { %v1405_v29 = vmul.f32 %v2492_v27, %v1397_v57  ;;  %v2502_v27 = vmov 5  }
 0x516   :  { %v1406_v31 = vadd.f32 %v1405_v29, %v1390_v28  ;;  %v2503_v28 = vmov 6   ;;  %v2504_v29 = vmov 7  }
 0x518   :  { %v1414_v33 = vmul.f32 %v2055_v30, %v1406_v31 }
 0x51a   :  { %v1422_v34 = vadd.f32 %v2056_v32, %v1414_v33 }
 0x51c   :  { %v1423_v37 = vpack.c.bf16 %v1422_v34, %v1422_v34 }
 0x51e   :  { %2262 = vmatmul.mubr.msk.bf16.vlgmr.msra.gmra.mxu1 %vm161_vm2, %v1423_v37 }
 0x51f   :  { %2297 = vmatprep.mubr.msk.bf16.mxu1 %vm2496_vm0, %v2495_v0  ;;  %2284 = vmatpush3.bf16.msra.mxu1 %v2474_v43 }
 0x520   :  { %2285 = vmatprep.subr.bf16.mxu1 %v2495_v0 }
 0x523   :  { %2286 = vmatpush3.bf16.msra.mxu1 %v2475_v35 }
 0x524   :  { %2287 = vmatprep.subr.bf16.mxu1 %v2495_v0 }
 0x527   :  { %2288 = vmatpush3.bf16.msra.mxu1 %v2476_v41 }
 0x528   :  { %2289 = vmatprep.subr.bf16.mxu1 %v2495_v0 }
 0x52b   :  { %2290 = vmatpush3.bf16.msra.mxu1 %v2477_v16  ;;  %v1736_v16 = vld [vmem:[%s3236_s14] sm:$0xff] }
 0x52c   :  { %2291 = vmatprep.subr.bf16.mxu1 %v2495_v0 }
 0x52f   :  { %2292 = vmatpush3.bf16.msra.mxu1 %v2478_v36 }
 0x530   :  { %2293 = vmatprep.subr.bf16.mxu1 %v2495_v0 }
 0x533   :  { %2294 = vmatpush3.bf16.msra.mxu1 %v2479_v44 }
 0x534   :  { %2295 = vmatprep.subr.bf16.mxu1 %v2495_v0 }
 0x537   :  { %2296 = vmatpush3.bf16.msra.mxu1 %v2480_v55  ;;  %v1824_v55 = vsub.s32 4, %v2636_v7 }
 0x5de   :  { %v1517_v45 = vpop.f32.mrf.mxu1 }
 0x5df   :  { %v1523_v46 = vadd.f32 3.0, %v1517_v45 }
 0x5e0   :  { %v2263_v47 = vpop.f32.mrf.mxu1 }
 0x5e1   :  { %v1524_v48 = vmax.f32 %v1523_v46, 0.0  ;;  %v1737_v46 = vld [vmem:[%s3237_s15] sm:$0xff] }
 0x5e2   :  { %v1520_v49 = vpop.f32.mrf.mxu1 }
 0x5e3   :  { %v1525_v50 = vmin.f32 %v1524_v48, 6.0 }
 0x5e4   :  { %v2264_v51 = vpop.f32.mrf.mxu1 }
 0x5e5   :  { %v1526_v52 = vmul.f32 %v1525_v50, %v1517_v45  ;;  %v1814_v50 = vsub.s32 3, %v2636_v7 }
 0x5e7   :  { %v1527_v53 = vmul.f32 0.16666667, %v1526_v52 }
 0x5e9   :  { %v1528_v54 = vpack.c.bf16 %v1527_v53, %v1527_v53 }
 0x5eb   :  { %2280 = vmatmul.mubr.msk.bf16.vlgmr.msra.gmra.mxu0 %vm161_vm2, %v1528_v54 }
 0x6ab   :  { %v1622_v56 = vpop.f32.mrf.mxu0 }
 0x6ac   :  { %v1628_v0 = vadd.f32 %v1622_v56, %v3052_v38 }
 0x6ad   :  { %v2281_v57 = vpop.f32.mrf.mxu0 }
 0x6ae   :  { %v1629_v58 = vpack.c.bf16 %v1628_v0, %v1628_v0  ;;  %v1834_v0 = vsub.s32 5, %v2636_v7 }
 0x6af   :  { %v1625_v17 = vpop.f32.mrf.mxu0 }
 0x6b0   :  { %2298 = vmatmul.mubr.msk.bf16.vlgmr.msra.gmra.mxu1 %vm161_vm2, %v1629_v58  ;;  %v1844_v17 = vsub.s32 6, %v2636_v7 }
 0x6b1   :  { %v2282_v14 = vpop.f32.mrf.mxu0 }
 0x770   :  { %v1730_v13 = vpop.f32.mrf.mxu1 }
 0x771   :  { %v3174_v60 = vadd.f32 %v2073_v59, %v1730_v13 }
 0x772   :  { %v2299_v61 = vpop.f32.mrf.mxu1 }
 0x773   :  { %v1739_v62 = vsel %vm1738_vm3, %v3174_v60, 0.0 }
 0x774   :  { %1740 = vadd.xlane.f32.xlu0 %v1739_v62  ;;  %v1733_v38 = vpop.f32.mrf.mxu1 }
 0x775   :  { %v1854_v38 = vsub.s32 7, %v2636_v7 }
 0x776   :  { %v2300_v63 = vpop.f32.mrf.mxu1 }
 0x78a   :  { %1780 = vperm.xlu0 %2317, %v1776_v2  }
 0x78e   :  { %2326 = vset.pattern.permute.xlu0 %v2498_v1 }
 0x78f   :  { %1874 = vperm.xlu0 %2326, %v1777_v24  }
 0x793   :  { %2329 = vset.pattern.permute.xlu0 %v2500_v25 }
 0x7fd   :  { %v1741_v3 = vpop.xlane.xlu0 %1740 }
 0x7fe   :  { %v1742_v4 = vrot.slane %v1741_v3, 4 }
 0x800   :  { %v1743_v5 = vadd.f32 %v1742_v4, %v1741_v3 }
 0x802   :  { %v1744_v6 = vrot.slane %v1743_v5, 2 }
 0x804   :  { %v1745_v10 = vadd.f32 %v1744_v6, %v1743_v5 }
 0x805   :  { %v1781_v49 = vpop.permute.xlu0 %1780 }
 0x806   :  { %v1746_v15 = vrot.slane %v1745_v10, 1 }
 0x808   :  { %v1747_v18 = vadd.f32 %v1746_v15, %v1745_v10 }
 0x80a   :  { %2301 = vpush %v1747_v18 }
 0x83b   :  { %s2302_s13 = spop %2301 }
 0x83c   :  { %s1751_s8 = smul.f32 0.004464286, %s2302_s13 }
 0x83e   :  { %v1752_v19 = vstv %s1751_s8 }
 0x83f   :  { %v1753_v20 = vsub.f32 %v3174_v60, %v1752_v19 }
 0x841   :  { %v1754_v21 = vmul.f32 %v1753_v20, %v1753_v20 }
 0x843   :  { %v1755_v22 = vsel %vm1738_vm3, %v1754_v21, 0.0 }
 0x844   :  { %1756 = vadd.xlane.f32.xlu1 %v1755_v22 }
 0x855   :  { %1789 = vperm.xlu1 %2318, %v1776_v2  }
 0x859   :  { %2319 = vset.pattern.permute.xlu1 %v2499_v23 }
 0x85a   :  { %1799 = vperm.xlu1 %2319, %v1776_v2  }
 0x85e   :  { %2320 = vset.pattern.permute.xlu1 %v2500_v25 }
 0x85f   :  { %1809 = vperm.xlu1 %2320, %v1776_v2  }
 0x863   :  { %2321 = vset.pattern.permute.xlu1 %v2501_v26 }
 0x864   :  { %1819 = vperm.xlu1 %2321, %v1776_v2  }
 0x868   :  { %2322 = vset.pattern.permute.xlu1 %v2502_v27 }
 0x869   :  { %1829 = vperm.xlu1 %2322, %v1776_v2  }
 0x86d   :  { %2323 = vset.pattern.permute.xlu1 %v2503_v28 }
 0x86e   :  { %1839 = vperm.xlu1 %2323, %v1776_v2  }
 0x872   :  { %2324 = vset.pattern.permute.xlu1 %v2504_v29  ;;  %v1875_v29 = vpop.permute.xlu0 %1874 }
 0x873   :  { %1849 = vperm.xlu1 %2324, %v1776_v2  }
 0x877   :  { %2325 = vset.pattern.permute.xlu1 %v2497_v12 }
 0x878   :  { %1865 = vperm.xlu1 %2325, %v1777_v24  }
 0x87c   :  { %2327 = vset.pattern.permute.xlu1 %v2499_v23 }
 0x87d   :  { %1884 = vperm.xlu1 %2327, %v1777_v24  }
 0x881   :  { %2328 = vset.pattern.permute.xlu1 %v2500_v25 }
 0x882   :  { %1894 = vperm.xlu1 %2328, %v1777_v24  }
 0x8cd   :  { %v1757_v30 = vpop.xlane.xlu1 %1756 }
 0x8ce   :  { %v1758_v31 = vrot.slane %v1757_v30, 4 }
 0x8d0   :  { %v1759_v32 = vadd.f32 %v1758_v31, %v1757_v30 }
 0x8d1   :  { %v1790_v43 = vpop.permute.xlu1 %1789 }
 0x8d2   :  { %v1760_v33 = vrot.slane %v1759_v32, 2 }
 0x8d4   :  { %v1761_v34 = vadd.f32 %v1760_v33, %v1759_v32 }
 0x8d5   :  { %v1800_v35 = vpop.permute.xlu1 %1799 }
 0x8d6   :  { %v1762_v37 = vrot.slane %v1761_v34, 1 }
 0x8d8   :  { %v1763_v39 = vadd.f32 %v1762_v37, %v1761_v34 }
 0x8da   :  { %2303 = vpush %v1763_v39  ;;  %v1810_v41 = vpop.permute.xlu1 %1809 }
 0x8df   :  { %v1820_v44 = vpop.permute.xlu1 %1819 }
 0x8e4   :  { %v1830_v51 = vpop.permute.xlu1 %1829 }
 0x8e9   :  { %v1840_v61 = vpop.permute.xlu1 %1839 }
 0x8ee   :  { %v1850_v15 = vpop.permute.xlu1 %1849 }
 0x8f3   :  { %v1866_v24 = vpop.permute.xlu1 %1865 }
 0x8f8   :  { %v1885_v7 = vpop.permute.xlu1 %1884 }
 0x8fd   :  { %v1895_v39 = vpop.permute.xlu1 %1894 }
 0x90b   :  { %s2304_s23 = spop %2303 }
 0x90c   :  { %s1767_s0 = smul.f32 0.004464286, %s2304_s23 }
 0x90e   :  { %s1768_s24 = sadd.f32 1e-05, %s1767_s0 }
 0x910   :  { %v1769_v12 = vstv %s1768_s24 }
 0x911   :  { %2493 = vrsqrt.f32 %v1769_v12 }
 0x91e   :  { %v2494_v42 = vpop.eup %2493 }
 0x91f   :  { %2305 = vpush %v2494_v42 }
 0x950   :  { %s2306_s1 = spop %2305 }
 0x951   :  { %v1772_v36 = vstv %s2306_s1 }
 0x952   :  { %v1773_v45 = vmul.f32 %v1772_v36, %v1753_v20 }
 0x954   :  { %v1774_v47 = vmul.f32 %v1773_v45, %v1736_v16  ;;  %v2084_v45 = vld [vmem:[#allocation2] ss:$0 sm:$0xff] }
 0x956   :  { %v1775_v48 = vadd.f32 %v1774_v47, %v1737_v46 }
 0x958   :  { %v1786_v52 = vrot.slane %v1775_v48, %v2642_v9  ;;  %v1795_v53 = vrot.slane %v1775_v48, %v2648_v11  ;;  %v1805_v54 = vrot.slane %v1775_v48, %v2639_v8  ;;  %v1815_v58 = vrot.slane %v1775_v48, %v1814_v50 }
 0x959   :  { %v1825_v13 = vrot.slane %v1775_v48, %v1824_v55  ;;  %v1835_v62 = vrot.slane %v1775_v48, %v1834_v0  ;;  %v1845_v2 = vrot.slane %v1775_v48, %v1844_v17  ;;  %v1855_v6 = vrot.slane %v1775_v48, %v1854_v38 }
 0x95a   :  { %v1787_v56 = vmul.f32 %v1786_v52, %v1781_v49  ;;  %v1796_v57 = vmul.f32 %v1795_v53, %v1790_v43  ;;  %v1806_v14 = vmul.f32 %v1805_v54, %v1800_v35  ;;  %v1816_v1 = vmul.f32 %v1815_v58, %v1810_v41  ;;  %v2082_v41 = vld [vmem:[%s3238_s18] ss:$0 sm:$0xff] }
 0x95b   :  { %v1826_v3 = vmul.f32 %v1825_v13, %v1820_v44  ;;  %v1836_v5 = vmul.f32 %v1835_v62, %v1830_v51  ;;  %v1846_v18 = vmul.f32 %v1845_v2, %v1840_v61  ;;  %v1856_v20 = vmul.f32 %v1855_v6, %v1850_v15 }
 0x95c   :  { %v1797_v59 = vadd.f32 %v1796_v57, %v1787_v56 }
 0x95e   :  { %v1807_v63 = vadd.f32 %v1806_v14, %v1797_v59 }
 0x960   :  { %v1817_v4 = vadd.f32 %v1816_v1, %v1807_v63 }
 0x962   :  { %v1827_v10 = vadd.f32 %v1826_v3, %v1817_v4 }
 0x964   :  { %v1837_v19 = vadd.f32 %v1836_v5, %v1827_v10 }
 0x966   :  { %v1847_v21 = vadd.f32 %v1846_v18, %v1837_v19 }
 0x968   :  { %v1857_v22 = vadd.f32 %v1856_v20, %v1847_v21 }
 0x96a   :  { %v1858_v23 = vadd.f32 3.0, %v1857_v22 }
 0x96c   :  { %v1859_v25 = vmax.f32 %v1858_v23, 0.0 }
 0x96e   :  { %v1860_v26 = vmin.f32 %v1859_v25, 6.0 }
 0x970   :  { %v1861_v27 = vmul.f32 %v1860_v26, %v1857_v22 }
 0x972   :  { %v1862_v28 = vmul.f32 0.16666667, %v1861_v27 }
 0x974   :  { %v1871_v30 = vrot.slane %v1862_v28, %v2642_v9  ;;  %v1890_v31 = vrot.slane %v1862_v28, %v2639_v8  ;;  %v1880_v32 = vrot.slane %v1862_v28, %v2648_v11  ;;  %v1900_v34 = vrot.slane %v1862_v28, %v1814_v50  ;;  %v2083_v9 = vld [vmem:[%s3239_s19] ss:$0 sm:$0xff] }
 0x975   :  { %v1911_v11 = vmul.f32 %v2082_v41, %v3174_v60 }
 0x976   :  { %v1872_v33 = vmul.f32 %v1871_v30, %v1866_v24  ;;  %v1881_v37 = vmul.f32 %v1880_v32, %v1875_v29  ;;  %v1891_v40 = vmul.f32 %v1890_v31, %v1885_v7  ;;  %v1901_v42 = vmul.f32 %v1900_v34, %v1895_v39 }
 0x978   :  { %v1882_v12 = vadd.f32 %v1881_v37, %v1872_v33 }
 0x97a   :  { %v1892_v43 = vadd.f32 %v1891_v40, %v1882_v12 }
 0x97c   :  { %v1902_v35 = vadd.f32 %v1901_v42, %v1892_v43 }
 0x97e   :  { %v1903_v8 = vadd.f32 %v1902_v35, %v3174_v60 }
 0x980   :  { %v1919_v16 = vmul.f32 %v2083_v9, %v1903_v8 }
 0x982   :  { %v1920_v36 = vadd.f32 %v1919_v16, %v1911_v11 }
 0x984   :  { %v1921_v44 = vsel %vm1738_vm3, %v1920_v36, 0.0 }
 0x985   :  { %1922 = vadd.xlane.f32.xlu0 %v1921_v44 }
 0xa0e   :  { %v1923_v46 = vpop.xlane.xlu0 %1922 }
 0xa0f   :  { %v1931_v47 = vadd.f32 %v2084_v45, %v1923_v46 }
 0xa11   :  { %1933 = vst.msk [vmem:[%s3240_s21] sm:$0xff] %vm1932_vm4, %v1931_v47 }

</bundles_post_ra>
